<compile_context>
chip_gen: v6e
topology: v6e:2x2x1
jax: 0.10.0
libtpu: 0.0.40
codegen_flags: <defaults>
</compile_context>

<pallas_src>
import functools
import math

import jax
import jax.numpy as jnp
from jax.experimental import pallas as pl
from jax.experimental.pallas import tpu as pltpu


# ----------------------------------------------------------------------------
# Fused Pallas kernel: LSTM layer 1 -> LSTM layer 2 -> Linear head
# ----------------------------------------------------------------------------
def _fused_lstm_kernel(xf_ref, wih1_ref, whh1_ref, b1_ref,
                       wih2_ref, whh2_ref, b2_ref,
                       wlin_ref, blin_ref, out_ref, *, T, B, H):
    """All refs are whole-array VMEM blocks.

    xf_ref:   (T*B, F)   flattened input sequence
    wih*_ref: (F|H, 4H)  W_ih transposed (per layer)
    whh*_ref: (H, 4H)    W_hh transposed (per layer)
    b*_ref:   (1, 4H)    b_ih + b_hh (per layer)
    wlin_ref: (H, Y)     Linear weight transposed
    blin_ref: (1, Y)     Linear bias
    out_ref:  (T, Y)     final prediction
    """

    def recurrence(gx, whh):
        # gx: (T*B, 4H) hoisted input projection (bias already folded in).
        # whh: (H, 4H).  Returns the per-step hidden states as a Python list.
        h = jnp.zeros((B, H), jnp.float32)
        c = jnp.zeros((B, H), jnp.float32)
        hs = []
        for t in range(T):  # static trip count -> fully unrolled at trace time
            gates = gx[t * B:(t + 1) * B, :] + jnp.dot(
                h, whh, preferred_element_type=jnp.float32)      # (B, 4H)
            sg = jax.nn.sigmoid(gates)   # one full-width EUP pass
            tg = jnp.tanh(gates)         # one full-width EUP pass
            i_g = sg[:, 0 * H:1 * H]     # PyTorch gate order: i, f, g, o
            f_g = sg[:, 1 * H:2 * H]
            g_g = tg[:, 2 * H:3 * H]
            o_g = sg[:, 3 * H:4 * H]
            c = f_g * c + i_g * g_g
            h = o_g * jnp.tanh(c)
            hs.append(h)
        return hs

    # ---- layer 1: hoisted input projection, then the serial recurrence ----
    gx1 = jnp.dot(xf_ref[...], wih1_ref[...],
                  preferred_element_type=jnp.float32) + b1_ref[...]   # (T*B, 4H)
    h1 = recurrence(gx1, whh1_ref[...])
    h1_all = jnp.concatenate(h1, axis=0)                              # (T*B, H)

    # ---- layer 2 ----
    gx2 = jnp.dot(h1_all, wih2_ref[...],
                  preferred_element_type=jnp.float32) + b2_ref[...]   # (T*B, 4H)
    h2 = recurrence(gx2, whh2_ref[...])

    # ---- head: lstm_out[:, -1] == LAST BATCH element at every time step ----
    last = jnp.concatenate([ht[B - 1:B, :] for ht in h2], axis=0)     # (T, H)
    out_ref[...] = (jnp.dot(last, wlin_ref[...],
                            preferred_element_type=jnp.float32)
                    + blin_ref[...])                                  # (T, Y)


def lstm_model_forward(kernel_params, sequences):
    """sequences: (seq_len, batch, n_features) -> (seq_len, y_length)."""
    (wih1, whh1, b1), (wih2, whh2, b2), (wlin, blin) = kernel_params
    T, B, F = sequences.shape
    H = whh1.shape[0]
    Y = wlin.shape[1]
    x_flat = sequences.reshape(T * B, F)

    vmem = pl.BlockSpec(memory_space=pltpu.MemorySpace.VMEM)
    return pl.pallas_call(
        functools.partial(_fused_lstm_kernel, T=T, B=B, H=H),
        out_shape=jax.ShapeDtypeStruct((T, Y), jnp.float32),
        in_specs=[vmem] * 9,
        out_specs=vmem,
    )(x_flat, wih1, whh1, b1, wih2, whh2, b2, wlin, blin)


# ----------------------------------------------------------------------------
# Parameters (PyTorch-convention shapes) + one-time kernel-layout prep
# ----------------------------------------------------------------------------
def init_params(key, n_features, n_hidden, y_length, n_layers=2):
    stdv = 1.0 / math.sqrt(n_hidden)
    params = {"lstm": [], "linear": None}
    for layer in range(n_layers):
        in_size = n_features if layer == 0 else n_hidden
        key, k1, k2, k3, k4 = jax.random.split(key, 5)
        w_ih = jax.random.uniform(k1, (4 * n_hidden, in_size), jnp.float32, -stdv, stdv)
        w_hh = jax.random.uniform(k2, (4 * n_hidden, n_hidden), jnp.float32, -stdv, stdv)
        b_ih = jax.random.uniform(k3, (4 * n_hidden,), jnp.float32, -stdv, stdv)
        b_hh = jax.random.uniform(k4, (4 * n_hidden,), jnp.float32, -stdv, stdv)
        params["lstm"].append((w_ih, w_hh, b_ih, b_hh))
    key, k1, k2 = jax.random.split(key, 3)
    w = jax.random.uniform(k1, (y_length, n_hidden), jnp.float32, -stdv, stdv)
    b = jax.random.uniform(k2, (y_length,), jnp.float32, -stdv, stdv)
    params["linear"] = (w, b)
    return params


def prepare_kernel_params(params):
    """Transpose weights and fuse biases ONCE (not on every forward call)."""
    assert len(params["lstm"]) == 2, "fused kernel is written for n_layers=2"
    lstm_kp = tuple(
        (jnp.asarray(w_ih.T), jnp.asarray(w_hh.T), (b_ih + b_hh)[None, :])
        for (w_ih, w_hh, b_ih, b_hh) in params["lstm"]
    )
    w, b = params["linear"]
    return lstm_kp + ((jnp.asarray(w.T), b[None, :]),)


# ----------------------------------------------------------------------------
# Pure-JAX reference (validation only)
# ----------------------------------------------------------------------------
def _ref_forward(params, sequences):
    x = sequences
    for (w_ih, w_hh, b_ih, b_hh) in params["lstm"]:
        T, B, _ = x.shape
        H = w_hh.shape[1]

        def step(carry, x_t):
            h, c = carry
            g = x_t @ w_ih.T + h @ w_hh.T + b_ih + b_hh
            i = jax.nn.sigmoid(g[:, 0 * H:1 * H])
            f = jax.nn.sigmoid(g[:, 1 * H:2 * H])
            gg = jnp.tanh(g[:, 2 * H:3 * H])
            o = jax.nn.sigmoid(g[:, 3 * H:4 * H])
            c = f * c + i * gg
            h = o * jnp.tanh(c)
            return (h, c), h

        init = (jnp.zeros((B, H), jnp.float32), jnp.zeros((B, H), jnp.float32))
        _, outs = jax.lax.scan(step, init, x)
        x = outs
    last = x[:, -1]
    w, b = params["linear"]
    return last @ w.T + b


# ----------------------------------------------------------------------------
if __name__ == "__main__":
    n_features, n_hidden, seq_len, y_length, n_layers = 4, 32, 8, 5, 2
    batch = 2

    key = jax.random.PRNGKey(0)
    key, pkey, xkey = jax.random.split(key, 3)
    params = init_params(pkey, n_features, n_hidden, y_length, n_layers)
    kparams = prepare_kernel_params(params)

    # (seq_len, batch, n_features) — nn.LSTM default layout
    sequences = jax.random.normal(xkey, (seq_len, batch, n_features), jnp.float32)

    fwd = jax.jit(lstm_model_forward)
    y_pred = jax.block_until_ready(fwd(kparams, sequences))

    y_ref = _ref_forward(params, sequences)
    assert y_pred.shape == (seq_len, y_length)
    assert jnp.allclose(y_pred, y_ref, atol=1e-5, rtol=1e-5), "mismatch vs reference"

    print("KERNEL_OK")
</pallas_src>

<mosaic_0001>
module attributes {stable_mosaic.version = 11 : i64} {
  func.func @_fused_lstm_kernel(%arg0: memref<16x4xf32, #tpu.memory_space<vmem>>, %arg1: memref<4x128xf32, #tpu.memory_space<vmem>>, %arg2: memref<32x128xf32, #tpu.memory_space<vmem>>, %arg3: memref<1x128xf32, #tpu.memory_space<vmem>>, %arg4: memref<32x128xf32, #tpu.memory_space<vmem>>, %arg5: memref<32x128xf32, #tpu.memory_space<vmem>>, %arg6: memref<1x128xf32, #tpu.memory_space<vmem>>, %arg7: memref<32x5xf32, #tpu.memory_space<vmem>>, %arg8: memref<1x5xf32, #tpu.memory_space<vmem>>, %arg9: memref<8x5xf32, #tpu.memory_space<vmem>>) attributes {dimension_semantics = [], scalar_prefetch = 0 : i64, scratch_operands = 0 : i64, tpu.core_type = #tpu.core_type<tc>} {
    %c0 = arith.constant 0 : index
    %c0_0 = arith.constant 0 : index
    %0 = vector.load %arg0[%c0, %c0_0] : memref<16x4xf32, #tpu.memory_space<vmem>>, vector<16x4xf32>
    %c0_1 = arith.constant 0 : index
    %c0_2 = arith.constant 0 : index
    %1 = vector.load %arg1[%c0_1, %c0_2] : memref<4x128xf32, #tpu.memory_space<vmem>>, vector<4x128xf32>
    %cst = arith.constant dense<0.000000e+00> : vector<16x128xf32>
    %2 = tpu.matmul %0, %1, %cst {dimension_numbers = #tpu.dot_dimension_numbers<[1], [0], [0], [1], [0, 0, 1, 1], [], []>} : vector<16x4xf32>, vector<4x128xf32>, vector<16x128xf32> -> vector<16x128xf32>
    %c0_3 = arith.constant 0 : index
    %c0_4 = arith.constant 0 : index
    %3 = vector.load %arg3[%c0_3, %c0_4] : memref<1x128xf32, #tpu.memory_space<vmem>>, vector<1x128xf32>
    %4 = vector.broadcast %3 : vector<1x128xf32> to vector<16x128xf32>
    %5 = arith.addf %2, %4 : vector<16x128xf32>
    %c0_5 = arith.constant 0 : index
    %c0_6 = arith.constant 0 : index
    %6 = vector.load %arg2[%c0_5, %c0_6] : memref<32x128xf32, #tpu.memory_space<vmem>>, vector<32x128xf32>
    %cst_7 = arith.constant 0.000000e+00 : f32
    %7 = vector.broadcast %cst_7 : f32 to vector<2x32xf32>
    %cst_8 = arith.constant 0.000000e+00 : f32
    %8 = vector.broadcast %cst_8 : f32 to vector<2x32xf32>
    %9 = vector.extract_strided_slice %5 {offsets = [0, 0], sizes = [2, 128], strides = [1, 1]} : vector<16x128xf32> to vector<2x128xf32>
    %cst_9 = arith.constant dense<0.000000e+00> : vector<2x128xf32>
    %10 = tpu.matmul %7, %6, %cst_9 {dimension_numbers = #tpu.dot_dimension_numbers<[1], [0], [0], [1], [0, 0, 1, 1], [], []>} : vector<2x32xf32>, vector<32x128xf32>, vector<2x128xf32> -> vector<2x128xf32>
    %11 = arith.addf %9, %10 : vector<2x128xf32>
    %12 = arith.negf %11 : vector<2x128xf32>
    %13 = math.exp %12 : vector<2x128xf32>
    %cst_10 = arith.constant 1.000000e+00 : f32
    %14 = vector.broadcast %cst_10 : f32 to vector<2x128xf32>
    %15 = arith.addf %14, %13 : vector<2x128xf32>
    %16 = arith.divf %14, %15 : vector<2x128xf32>
    %17 = math.tanh %11 : vector<2x128xf32>
    %18 = vector.extract_strided_slice %16 {offsets = [0, 0], sizes = [2, 32], strides = [1, 1]} : vector<2x128xf32> to vector<2x32xf32>
    %19 = vector.extract_strided_slice %16 {offsets = [0, 32], sizes = [2, 32], strides = [1, 1]} : vector<2x128xf32> to vector<2x32xf32>
    %20 = vector.extract_strided_slice %17 {offsets = [0, 64], sizes = [2, 32], strides = [1, 1]} : vector<2x128xf32> to vector<2x32xf32>
    %21 = vector.extract_strided_slice %16 {offsets = [0, 96], sizes = [2, 32], strides = [1, 1]} : vector<2x128xf32> to vector<2x32xf32>
    %22 = arith.mulf %19, %8 : vector<2x32xf32>
    %23 = arith.mulf %18, %20 : vector<2x32xf32>
    %24 = arith.addf %22, %23 : vector<2x32xf32>
    %25 = math.tanh %24 : vector<2x32xf32>
    %26 = arith.mulf %21, %25 : vector<2x32xf32>
    %27 = vector.extract_strided_slice %5 {offsets = [2, 0], sizes = [2, 128], strides = [1, 1]} : vector<16x128xf32> to vector<2x128xf32>
    %cst_11 = arith.constant dense<0.000000e+00> : vector<2x128xf32>
    %28 = tpu.matmul %26, %6, %cst_11 {dimension_numbers = #tpu.dot_dimension_numbers<[1], [0], [0], [1], [0, 0, 1, 1], [], []>} : vector<2x32xf32>, vector<32x128xf32>, vector<2x128xf32> -> vector<2x128xf32>
    %29 = arith.addf %27, %28 : vector<2x128xf32>
    %30 = arith.negf %29 : vector<2x128xf32>
    %31 = math.exp %30 : vector<2x128xf32>
    %cst_12 = arith.constant 1.000000e+00 : f32
    %32 = vector.broadcast %cst_12 : f32 to vector<2x128xf32>
    %33 = arith.addf %32, %31 : vector<2x128xf32>
    %34 = arith.divf %32, %33 : vector<2x128xf32>
    %35 = math.tanh %29 : vector<2x128xf32>
    %36 = vector.extract_strided_slice %34 {offsets = [0, 0], sizes = [2, 32], strides = [1, 1]} : vector<2x128xf32> to vector<2x32xf32>
    %37 = vector.extract_strided_slice %34 {offsets = [0, 32], sizes = [2, 32], strides = [1, 1]} : vector<2x128xf32> to vector<2x32xf32>
    %38 = vector.extract_strided_slice %35 {offsets = [0, 64], sizes = [2, 32], strides = [1, 1]} : vector<2x128xf32> to vector<2x32xf32>
    %39 = vector.extract_strided_slice %34 {offsets = [0, 96], sizes = [2, 32], strides = [1, 1]} : vector<2x128xf32> to vector<2x32xf32>
    %40 = arith.mulf %37, %24 : vector<2x32xf32>
    %41 = arith.mulf %36, %38 : vector<2x32xf32>
    %42 = arith.addf %40, %41 : vector<2x32xf32>
    %43 = math.tanh %42 : vector<2x32xf32>
    %44 = arith.mulf %39, %43 : vector<2x32xf32>
    %45 = vector.extract_strided_slice %5 {offsets = [4, 0], sizes = [2, 128], strides = [1, 1]} : vector<16x128xf32> to vector<2x128xf32>
    %cst_13 = arith.constant dense<0.000000e+00> : vector<2x128xf32>
    %46 = tpu.matmul %44, %6, %cst_13 {dimension_numbers = #tpu.dot_dimension_numbers<[1], [0], [0], [1], [0, 0, 1, 1], [], []>} : vector<2x32xf32>, vector<32x128xf32>, vector<2x128xf32> -> vector<2x128xf32>
    %47 = arith.addf %45, %46 : vector<2x128xf32>
    %48 = arith.negf %47 : vector<2x128xf32>
    %49 = math.exp %48 : vector<2x128xf32>
    %cst_14 = arith.constant 1.000000e+00 : f32
    %50 = vector.broadcast %cst_14 : f32 to vector<2x128xf32>
    %51 = arith.addf %50, %49 : vector<2x128xf32>
    %52 = arith.divf %50, %51 : vector<2x128xf32>
    %53 = math.tanh %47 : vector<2x128xf32>
    %54 = vector.extract_strided_slice %52 {offsets = [0, 0], sizes = [2, 32], strides = [1, 1]} : vector<2x128xf32> to vector<2x32xf32>
    %55 = vector.extract_strided_slice %52 {offsets = [0, 32], sizes = [2, 32], strides = [1, 1]} : vector<2x128xf32> to vector<2x32xf32>
    %56 = vector.extract_strided_slice %53 {offsets = [0, 64], sizes = [2, 32], strides = [1, 1]} : vector<2x128xf32> to vector<2x32xf32>
    %57 = vector.extract_strided_slice %52 {offsets = [0, 96], sizes = [2, 32], strides = [1, 1]} : vector<2x128xf32> to vector<2x32xf32>
    %58 = arith.mulf %55, %42 : vector<2x32xf32>
    %59 = arith.mulf %54, %56 : vector<2x32xf32>
    %60 = arith.addf %58, %59 : vector<2x32xf32>
    %61 = math.tanh %60 : vector<2x32xf32>
    %62 = arith.mulf %57, %61 : vector<2x32xf32>
    %63 = vector.extract_strided_slice %5 {offsets = [6, 0], sizes = [2, 128], strides = [1, 1]} : vector<16x128xf32> to vector<2x128xf32>
    %cst_15 = arith.constant dense<0.000000e+00> : vector<2x128xf32>
    %64 = tpu.matmul %62, %6, %cst_15 {dimension_numbers = #tpu.dot_dimension_numbers<[1], [0], [0], [1], [0, 0, 1, 1], [], []>} : vector<2x32xf32>, vector<32x128xf32>, vector<2x128xf32> -> vector<2x128xf32>
    %65 = arith.addf %63, %64 : vector<2x128xf32>
    %66 = arith.negf %65 : vector<2x128xf32>
    %67 = math.exp %66 : vector<2x128xf32>
    %cst_16 = arith.constant 1.000000e+00 : f32
    %68 = vector.broadcast %cst_16 : f32 to vector<2x128xf32>
    %69 = arith.addf %68, %67 : vector<2x128xf32>
    %70 = arith.divf %68, %69 : vector<2x128xf32>
    %71 = math.tanh %65 : vector<2x128xf32>
    %72 = vector.extract_strided_slice %70 {offsets = [0, 0], sizes = [2, 32], strides = [1, 1]} : vector<2x128xf32> to vector<2x32xf32>
    %73 = vector.extract_strided_slice %70 {offsets = [0, 32], sizes = [2, 32], strides = [1, 1]} : vector<2x128xf32> to vector<2x32xf32>
    %74 = vector.extract_strided_slice %71 {offsets = [0, 64], sizes = [2, 32], strides = [1, 1]} : vector<2x128xf32> to vector<2x32xf32>
    %75 = vector.extract_strided_slice %70 {offsets = [0, 96], sizes = [2, 32], strides = [1, 1]} : vector<2x128xf32> to vector<2x32xf32>
    %76 = arith.mulf %73, %60 : vector<2x32xf32>
    %77 = arith.mulf %72, %74 : vector<2x32xf32>
    %78 = arith.addf %76, %77 : vector<2x32xf32>
    %79 = math.tanh %78 : vector<2x32xf32>
    %80 = arith.mulf %75, %79 : vector<2x32xf32>
    %81 = vector.extract_strided_slice %5 {offsets = [8, 0], sizes = [2, 128], strides = [1, 1]} : vector<16x128xf32> to vector<2x128xf32>
    %cst_17 = arith.constant dense<0.000000e+00> : vector<2x128xf32>
    %82 = tpu.matmul %80, %6, %cst_17 {dimension_numbers = #tpu.dot_dimension_numbers<[1], [0], [0], [1], [0, 0, 1, 1], [], []>} : vector<2x32xf32>, vector<32x128xf32>, vector<2x128xf32> -> vector<2x128xf32>
    %83 = arith.addf %81, %82 : vector<2x128xf32>
    %84 = arith.negf %83 : vector<2x128xf32>
    %85 = math.exp %84 : vector<2x128xf32>
    %cst_18 = arith.constant 1.000000e+00 : f32
    %86 = vector.broadcast %cst_18 : f32 to vector<2x128xf32>
    %87 = arith.addf %86, %85 : vector<2x128xf32>
    %88 = arith.divf %86, %87 : vector<2x128xf32>
    %89 = math.tanh %83 : vector<2x128xf32>
    %90 = vector.extract_strided_slice %88 {offsets = [0, 0], sizes = [2, 32], strides = [1, 1]} : vector<2x128xf32> to vector<2x32xf32>
    %91 = vector.extract_strided_slice %88 {offsets = [0, 32], sizes = [2, 32], strides = [1, 1]} : vector<2x128xf32> to vector<2x32xf32>
    %92 = vector.extract_strided_slice %89 {offsets = [0, 64], sizes = [2, 32], strides = [1, 1]} : vector<2x128xf32> to vector<2x32xf32>
    %93 = vector.extract_strided_slice %88 {offsets = [0, 96], sizes = [2, 32], strides = [1, 1]} : vector<2x128xf32> to vector<2x32xf32>
    %94 = arith.mulf %91, %78 : vector<2x32xf32>
    %95 = arith.mulf %90, %92 : vector<2x32xf32>
    %96 = arith.addf %94, %95 : vector<2x32xf32>
    %97 = math.tanh %96 : vector<2x32xf32>
    %98 = arith.mulf %93, %97 : vector<2x32xf32>
    %99 = vector.extract_strided_slice %5 {offsets = [10, 0], sizes = [2, 128], strides = [1, 1]} : vector<16x128xf32> to vector<2x128xf32>
    %cst_19 = arith.constant dense<0.000000e+00> : vector<2x128xf32>
    %100 = tpu.matmul %98, %6, %cst_19 {dimension_numbers = #tpu.dot_dimension_numbers<[1], [0], [0], [1], [0, 0, 1, 1], [], []>} : vector<2x32xf32>, vector<32x128xf32>, vector<2x128xf32> -> vector<2x128xf32>
    %101 = arith.addf %99, %100 : vector<2x128xf32>
    %102 = arith.negf %101 : vector<2x128xf32>
    %103 = math.exp %102 : vector<2x128xf32>
    %cst_20 = arith.constant 1.000000e+00 : f32
    %104 = vector.broadcast %cst_20 : f32 to vector<2x128xf32>
    %105 = arith.addf %104, %103 : vector<2x128xf32>
    %106 = arith.divf %104, %105 : vector<2x128xf32>
    %107 = math.tanh %101 : vector<2x128xf32>
    %108 = vector.extract_strided_slice %106 {offsets = [0, 0], sizes = [2, 32], strides = [1, 1]} : vector<2x128xf32> to vector<2x32xf32>
    %109 = vector.extract_strided_slice %106 {offsets = [0, 32], sizes = [2, 32], strides = [1, 1]} : vector<2x128xf32> to vector<2x32xf32>
    %110 = vector.extract_strided_slice %107 {offsets = [0, 64], sizes = [2, 32], strides = [1, 1]} : vector<2x128xf32> to vector<2x32xf32>
    %111 = vector.extract_strided_slice %106 {offsets = [0, 96], sizes = [2, 32], strides = [1, 1]} : vector<2x128xf32> to vector<2x32xf32>
    %112 = arith.mulf %109, %96 : vector<2x32xf32>
    %113 = arith.mulf %108, %110 : vector<2x32xf32>
    %114 = arith.addf %112, %113 : vector<2x32xf32>
    %115 = math.tanh %114 : vector<2x32xf32>
    %116 = arith.mulf %111, %115 : vector<2x32xf32>
    %117 = vector.extract_strided_slice %5 {offsets = [12, 0], sizes = [2, 128], strides = [1, 1]} : vector<16x128xf32> to vector<2x128xf32>
    %cst_21 = arith.constant dense<0.000000e+00> : vector<2x128xf32>
    %118 = tpu.matmul %116, %6, %cst_21 {dimension_numbers = #tpu.dot_dimension_numbers<[1], [0], [0], [1], [0, 0, 1, 1], [], []>} : vector<2x32xf32>, vector<32x128xf32>, vector<2x128xf32> -> vector<2x128xf32>
    %119 = arith.addf %117, %118 : vector<2x128xf32>
    %120 = arith.negf %119 : vector<2x128xf32>
    %121 = math.exp %120 : vector<2x128xf32>
    %cst_22 = arith.constant 1.000000e+00 : f32
    %122 = vector.broadcast %cst_22 : f32 to vector<2x128xf32>
    %123 = arith.addf %122, %121 : vector<2x128xf32>
    %124 = arith.divf %122, %123 : vector<2x128xf32>
    %125 = math.tanh %119 : vector<2x128xf32>
    %126 = vector.extract_strided_slice %124 {offsets = [0, 0], sizes = [2, 32], strides = [1, 1]} : vector<2x128xf32> to vector<2x32xf32>
    %127 = vector.extract_strided_slice %124 {offsets = [0, 32], sizes = [2, 32], strides = [1, 1]} : vector<2x128xf32> to vector<2x32xf32>
    %128 = vector.extract_strided_slice %125 {offsets = [0, 64], sizes = [2, 32], strides = [1, 1]} : vector<2x128xf32> to vector<2x32xf32>
    %129 = vector.extract_strided_slice %124 {offsets = [0, 96], sizes = [2, 32], strides = [1, 1]} : vector<2x128xf32> to vector<2x32xf32>
    %130 = arith.mulf %127, %114 : vector<2x32xf32>
    %131 = arith.mulf %126, %128 : vector<2x32xf32>
    %132 = arith.addf %130, %131 : vector<2x32xf32>
    %133 = math.tanh %132 : vector<2x32xf32>
    %134 = arith.mulf %129, %133 : vector<2x32xf32>
    %135 = vector.extract_strided_slice %5 {offsets = [14, 0], sizes = [2, 128], strides = [1, 1]} : vector<16x128xf32> to vector<2x128xf32>
    %cst_23 = arith.constant dense<0.000000e+00> : vector<2x128xf32>
    %136 = tpu.matmul %134, %6, %cst_23 {dimension_numbers = #tpu.dot_dimension_numbers<[1], [0], [0], [1], [0, 0, 1, 1], [], []>} : vector<2x32xf32>, vector<32x128xf32>, vector<2x128xf32> -> vector<2x128xf32>
    %137 = arith.addf %135, %136 : vector<2x128xf32>
    %138 = arith.negf %137 : vector<2x128xf32>
    %139 = math.exp %138 : vector<2x128xf32>
    %cst_24 = arith.constant 1.000000e+00 : f32
    %140 = vector.broadcast %cst_24 : f32 to vector<2x128xf32>
    %141 = arith.addf %140, %139 : vector<2x128xf32>
    %142 = arith.divf %140, %141 : vector<2x128xf32>
    %143 = math.tanh %137 : vector<2x128xf32>
    %144 = vector.extract_strided_slice %142 {offsets = [0, 0], sizes = [2, 32], strides = [1, 1]} : vector<2x128xf32> to vector<2x32xf32>
    %145 = vector.extract_strided_slice %142 {offsets = [0, 32], sizes = [2, 32], strides = [1, 1]} : vector<2x128xf32> to vector<2x32xf32>
    %146 = vector.extract_strided_slice %143 {offsets = [0, 64], sizes = [2, 32], strides = [1, 1]} : vector<2x128xf32> to vector<2x32xf32>
    %147 = vector.extract_strided_slice %142 {offsets = [0, 96], sizes = [2, 32], strides = [1, 1]} : vector<2x128xf32> to vector<2x32xf32>
    %148 = arith.mulf %145, %132 : vector<2x32xf32>
    %149 = arith.mulf %144, %146 : vector<2x32xf32>
    %150 = arith.addf %148, %149 : vector<2x32xf32>
    %151 = math.tanh %150 : vector<2x32xf32>
    %152 = arith.mulf %147, %151 : vector<2x32xf32>
    %153 = tpu.concatenate %26, %44, %62, %80, %98, %116, %134, %152 in 0 : vector<2x32xf32>, vector<2x32xf32>, vector<2x32xf32>, vector<2x32xf32>, vector<2x32xf32>, vector<2x32xf32>, vector<2x32xf32>, vector<2x32xf32> -> vector<16x32xf32>
    %c0_25 = arith.constant 0 : index
    %c0_26 = arith.constant 0 : index
    %154 = vector.load %arg4[%c0_25, %c0_26] : memref<32x128xf32, #tpu.memory_space<vmem>>, vector<32x128xf32>
    %cst_27 = arith.constant dense<0.000000e+00> : vector<16x128xf32>
    %155 = tpu.matmul %153, %154, %cst_27 {dimension_numbers = #tpu.dot_dimension_numbers<[1], [0], [0], [1], [0, 0, 1, 1], [], []>} : vector<16x32xf32>, vector<32x128xf32>, vector<16x128xf32> -> vector<16x128xf32>
    %c0_28 = arith.constant 0 : index
    %c0_29 = arith.constant 0 : index
    %156 = vector.load %arg6[%c0_28, %c0_29] : memref<1x128xf32, #tpu.memory_space<vmem>>, vector<1x128xf32>
    %157 = vector.broadcast %156 : vector<1x128xf32> to vector<16x128xf32>
    %158 = arith.addf %155, %157 : vector<16x128xf32>
    %c0_30 = arith.constant 0 : index
    %c0_31 = arith.constant 0 : index
    %159 = vector.load %arg5[%c0_30, %c0_31] : memref<32x128xf32, #tpu.memory_space<vmem>>, vector<32x128xf32>
    %cst_32 = arith.constant 0.000000e+00 : f32
    %160 = vector.broadcast %cst_32 : f32 to vector<2x32xf32>
    %cst_33 = arith.constant 0.000000e+00 : f32
    %161 = vector.broadcast %cst_33 : f32 to vector<2x32xf32>
    %162 = vector.extract_strided_slice %158 {offsets = [0, 0], sizes = [2, 128], strides = [1, 1]} : vector<16x128xf32> to vector<2x128xf32>
    %cst_34 = arith.constant dense<0.000000e+00> : vector<2x128xf32>
    %163 = tpu.matmul %160, %159, %cst_34 {dimension_numbers = #tpu.dot_dimension_numbers<[1], [0], [0], [1], [0, 0, 1, 1], [], []>} : vector<2x32xf32>, vector<32x128xf32>, vector<2x128xf32> -> vector<2x128xf32>
    %164 = arith.addf %162, %163 : vector<2x128xf32>
    %165 = arith.negf %164 : vector<2x128xf32>
    %166 = math.exp %165 : vector<2x128xf32>
    %cst_35 = arith.constant 1.000000e+00 : f32
    %167 = vector.broadcast %cst_35 : f32 to vector<2x128xf32>
    %168 = arith.addf %167, %166 : vector<2x128xf32>
    %169 = arith.divf %167, %168 : vector<2x128xf32>
    %170 = math.tanh %164 : vector<2x128xf32>
    %171 = vector.extract_strided_slice %169 {offsets = [0, 0], sizes = [2, 32], strides = [1, 1]} : vector<2x128xf32> to vector<2x32xf32>
    %172 = vector.extract_strided_slice %169 {offsets = [0, 32], sizes = [2, 32], strides = [1, 1]} : vector<2x128xf32> to vector<2x32xf32>
    %173 = vector.extract_strided_slice %170 {offsets = [0, 64], sizes = [2, 32], strides = [1, 1]} : vector<2x128xf32> to vector<2x32xf32>
    %174 = vector.extract_strided_slice %169 {offsets = [0, 96], sizes = [2, 32], strides = [1, 1]} : vector<2x128xf32> to vector<2x32xf32>
    %175 = arith.mulf %172, %161 : vector<2x32xf32>
    %176 = arith.mulf %171, %173 : vector<2x32xf32>
    %177 = arith.addf %175, %176 : vector<2x32xf32>
    %178 = math.tanh %177 : vector<2x32xf32>
    %179 = arith.mulf %174, %178 : vector<2x32xf32>
    %180 = vector.extract_strided_slice %158 {offsets = [2, 0], sizes = [2, 128], strides = [1, 1]} : vector<16x128xf32> to vector<2x128xf32>
    %cst_36 = arith.constant dense<0.000000e+00> : vector<2x128xf32>
    %181 = tpu.matmul %179, %159, %cst_36 {dimension_numbers = #tpu.dot_dimension_numbers<[1], [0], [0], [1], [0, 0, 1, 1], [], []>} : vector<2x32xf32>, vector<32x128xf32>, vector<2x128xf32> -> vector<2x128xf32>
    %182 = arith.addf %180, %181 : vector<2x128xf32>
    %183 = arith.negf %182 : vector<2x128xf32>
    %184 = math.exp %183 : vector<2x128xf32>
    %cst_37 = arith.constant 1.000000e+00 : f32
    %185 = vector.broadcast %cst_37 : f32 to vector<2x128xf32>
    %186 = arith.addf %185, %184 : vector<2x128xf32>
    %187 = arith.divf %185, %186 : vector<2x128xf32>
    %188 = math.tanh %182 : vector<2x128xf32>
    %189 = vector.extract_strided_slice %187 {offsets = [0, 0], sizes = [2, 32], strides = [1, 1]} : vector<2x128xf32> to vector<2x32xf32>
    %190 = vector.extract_strided_slice %187 {offsets = [0, 32], sizes = [2, 32], strides = [1, 1]} : vector<2x128xf32> to vector<2x32xf32>
    %191 = vector.extract_strided_slice %188 {offsets = [0, 64], sizes = [2, 32], strides = [1, 1]} : vector<2x128xf32> to vector<2x32xf32>
    %192 = vector.extract_strided_slice %187 {offsets = [0, 96], sizes = [2, 32], strides = [1, 1]} : vector<2x128xf32> to vector<2x32xf32>
    %193 = arith.mulf %190, %177 : vector<2x32xf32>
    %194 = arith.mulf %189, %191 : vector<2x32xf32>
    %195 = arith.addf %193, %194 : vector<2x32xf32>
    %196 = math.tanh %195 : vector<2x32xf32>
    %197 = arith.mulf %192, %196 : vector<2x32xf32>
    %198 = vector.extract_strided_slice %158 {offsets = [4, 0], sizes = [2, 128], strides = [1, 1]} : vector<16x128xf32> to vector<2x128xf32>
    %cst_38 = arith.constant dense<0.000000e+00> : vector<2x128xf32>
    %199 = tpu.matmul %197, %159, %cst_38 {dimension_numbers = #tpu.dot_dimension_numbers<[1], [0], [0], [1], [0, 0, 1, 1], [], []>} : vector<2x32xf32>, vector<32x128xf32>, vector<2x128xf32> -> vector<2x128xf32>
    %200 = arith.addf %198, %199 : vector<2x128xf32>
    %201 = arith.negf %200 : vector<2x128xf32>
    %202 = math.exp %201 : vector<2x128xf32>
    %cst_39 = arith.constant 1.000000e+00 : f32
    %203 = vector.broadcast %cst_39 : f32 to vector<2x128xf32>
    %204 = arith.addf %203, %202 : vector<2x128xf32>
    %205 = arith.divf %203, %204 : vector<2x128xf32>
    %206 = math.tanh %200 : vector<2x128xf32>
    %207 = vector.extract_strided_slice %205 {offsets = [0, 0], sizes = [2, 32], strides = [1, 1]} : vector<2x128xf32> to vector<2x32xf32>
    %208 = vector.extract_strided_slice %205 {offsets = [0, 32], sizes = [2, 32], strides = [1, 1]} : vector<2x128xf32> to vector<2x32xf32>
    %209 = vector.extract_strided_slice %206 {offsets = [0, 64], sizes = [2, 32], strides = [1, 1]} : vector<2x128xf32> to vector<2x32xf32>
    %210 = vector.extract_strided_slice %205 {offsets = [0, 96], sizes = [2, 32], strides = [1, 1]} : vector<2x128xf32> to vector<2x32xf32>
    %211 = arith.mulf %208, %195 : vector<2x32xf32>
    %212 = arith.mulf %207, %209 : vector<2x32xf32>
    %213 = arith.addf %211, %212 : vector<2x32xf32>
    %214 = math.tanh %213 : vector<2x32xf32>
    %215 = arith.mulf %210, %214 : vector<2x32xf32>
    %216 = vector.extract_strided_slice %158 {offsets = [6, 0], sizes = [2, 128], strides = [1, 1]} : vector<16x128xf32> to vector<2x128xf32>
    %cst_40 = arith.constant dense<0.000000e+00> : vector<2x128xf32>
    %217 = tpu.matmul %215, %159, %cst_40 {dimension_numbers = #tpu.dot_dimension_numbers<[1], [0], [0], [1], [0, 0, 1, 1], [], []>} : vector<2x32xf32>, vector<32x128xf32>, vector<2x128xf32> -> vector<2x128xf32>
    %218 = arith.addf %216, %217 : vector<2x128xf32>
    %219 = arith.negf %218 : vector<2x128xf32>
    %220 = math.exp %219 : vector<2x128xf32>
    %cst_41 = arith.constant 1.000000e+00 : f32
    %221 = vector.broadcast %cst_41 : f32 to vector<2x128xf32>
    %222 = arith.addf %221, %220 : vector<2x128xf32>
    %223 = arith.divf %221, %222 : vector<2x128xf32>
    %224 = math.tanh %218 : vector<2x128xf32>
    %225 = vector.extract_strided_slice %223 {offsets = [0, 0], sizes = [2, 32], strides = [1, 1]} : vector<2x128xf32> to vector<2x32xf32>
    %226 = vector.extract_strided_slice %223 {offsets = [0, 32], sizes = [2, 32], strides = [1, 1]} : vector<2x128xf32> to vector<2x32xf32>
    %227 = vector.extract_strided_slice %224 {offsets = [0, 64], sizes = [2, 32], strides = [1, 1]} : vector<2x128xf32> to vector<2x32xf32>
    %228 = vector.extract_strided_slice %223 {offsets = [0, 96], sizes = [2, 32], strides = [1, 1]} : vector<2x128xf32> to vector<2x32xf32>
    %229 = arith.mulf %226, %213 : vector<2x32xf32>
    %230 = arith.mulf %225, %227 : vector<2x32xf32>
    %231 = arith.addf %229, %230 : vector<2x32xf32>
    %232 = math.tanh %231 : vector<2x32xf32>
    %233 = arith.mulf %228, %232 : vector<2x32xf32>
    %234 = vector.extract_strided_slice %158 {offsets = [8, 0], sizes = [2, 128], strides = [1, 1]} : vector<16x128xf32> to vector<2x128xf32>
    %cst_42 = arith.constant dense<0.000000e+00> : vector<2x128xf32>
    %235 = tpu.matmul %233, %159, %cst_42 {dimension_numbers = #tpu.dot_dimension_numbers<[1], [0], [0], [1], [0, 0, 1, 1], [], []>} : vector<2x32xf32>, vector<32x128xf32>, vector<2x128xf32> -> vector<2x128xf32>
    %236 = arith.addf %234, %235 : vector<2x128xf32>
    %237 = arith.negf %236 : vector<2x128xf32>
    %238 = math.exp %237 : vector<2x128xf32>
    %cst_43 = arith.constant 1.000000e+00 : f32
    %239 = vector.broadcast %cst_43 : f32 to vector<2x128xf32>
    %240 = arith.addf %239, %238 : vector<2x128xf32>
    %241 = arith.divf %239, %240 : vector<2x128xf32>
    %242 = math.tanh %236 : vector<2x128xf32>
    %243 = vector.extract_strided_slice %241 {offsets = [0, 0], sizes = [2, 32], strides = [1, 1]} : vector<2x128xf32> to vector<2x32xf32>
    %244 = vector.extract_strided_slice %241 {offsets = [0, 32], sizes = [2, 32], strides = [1, 1]} : vector<2x128xf32> to vector<2x32xf32>
    %245 = vector.extract_strided_slice %242 {offsets = [0, 64], sizes = [2, 32], strides = [1, 1]} : vector<2x128xf32> to vector<2x32xf32>
    %246 = vector.extract_strided_slice %241 {offsets = [0, 96], sizes = [2, 32], strides = [1, 1]} : vector<2x128xf32> to vector<2x32xf32>
    %247 = arith.mulf %244, %231 : vector<2x32xf32>
    %248 = arith.mulf %243, %245 : vector<2x32xf32>
    %249 = arith.addf %247, %248 : vector<2x32xf32>
    %250 = math.tanh %249 : vector<2x32xf32>
    %251 = arith.mulf %246, %250 : vector<2x32xf32>
    %252 = vector.extract_strided_slice %158 {offsets = [10, 0], sizes = [2, 128], strides = [1, 1]} : vector<16x128xf32> to vector<2x128xf32>
    %cst_44 = arith.constant dense<0.000000e+00> : vector<2x128xf32>
    %253 = tpu.matmul %251, %159, %cst_44 {dimension_numbers = #tpu.dot_dimension_numbers<[1], [0], [0], [1], [0, 0, 1, 1], [], []>} : vector<2x32xf32>, vector<32x128xf32>, vector<2x128xf32> -> vector<2x128xf32>
    %254 = arith.addf %252, %253 : vector<2x128xf32>
    %255 = arith.negf %254 : vector<2x128xf32>
    %256 = math.exp %255 : vector<2x128xf32>
    %cst_45 = arith.constant 1.000000e+00 : f32
    %257 = vector.broadcast %cst_45 : f32 to vector<2x128xf32>
    %258 = arith.addf %257, %256 : vector<2x128xf32>
    %259 = arith.divf %257, %258 : vector<2x128xf32>
    %260 = math.tanh %254 : vector<2x128xf32>
    %261 = vector.extract_strided_slice %259 {offsets = [0, 0], sizes = [2, 32], strides = [1, 1]} : vector<2x128xf32> to vector<2x32xf32>
    %262 = vector.extract_strided_slice %259 {offsets = [0, 32], sizes = [2, 32], strides = [1, 1]} : vector<2x128xf32> to vector<2x32xf32>
    %263 = vector.extract_strided_slice %260 {offsets = [0, 64], sizes = [2, 32], strides = [1, 1]} : vector<2x128xf32> to vector<2x32xf32>
    %264 = vector.extract_strided_slice %259 {offsets = [0, 96], sizes = [2, 32], strides = [1, 1]} : vector<2x128xf32> to vector<2x32xf32>
    %265 = arith.mulf %262, %249 : vector<2x32xf32>
    %266 = arith.mulf %261, %263 : vector<2x32xf32>
    %267 = arith.addf %265, %266 : vector<2x32xf32>
    %268 = math.tanh %267 : vector<2x32xf32>
    %269 = arith.mulf %264, %268 : vector<2x32xf32>
    %270 = vector.extract_strided_slice %158 {offsets = [12, 0], sizes = [2, 128], strides = [1, 1]} : vector<16x128xf32> to vector<2x128xf32>
    %cst_46 = arith.constant dense<0.000000e+00> : vector<2x128xf32>
    %271 = tpu.matmul %269, %159, %cst_46 {dimension_numbers = #tpu.dot_dimension_numbers<[1], [0], [0], [1], [0, 0, 1, 1], [], []>} : vector<2x32xf32>, vector<32x128xf32>, vector<2x128xf32> -> vector<2x128xf32>
    %272 = arith.addf %270, %271 : vector<2x128xf32>
    %273 = arith.negf %272 : vector<2x128xf32>
    %274 = math.exp %273 : vector<2x128xf32>
    %cst_47 = arith.constant 1.000000e+00 : f32
    %275 = vector.broadcast %cst_47 : f32 to vector<2x128xf32>
    %276 = arith.addf %275, %274 : vector<2x128xf32>
    %277 = arith.divf %275, %276 : vector<2x128xf32>
    %278 = math.tanh %272 : vector<2x128xf32>
    %279 = vector.extract_strided_slice %277 {offsets = [0, 0], sizes = [2, 32], strides = [1, 1]} : vector<2x128xf32> to vector<2x32xf32>
    %280 = vector.extract_strided_slice %277 {offsets = [0, 32], sizes = [2, 32], strides = [1, 1]} : vector<2x128xf32> to vector<2x32xf32>
    %281 = vector.extract_strided_slice %278 {offsets = [0, 64], sizes = [2, 32], strides = [1, 1]} : vector<2x128xf32> to vector<2x32xf32>
    %282 = vector.extract_strided_slice %277 {offsets = [0, 96], sizes = [2, 32], strides = [1, 1]} : vector<2x128xf32> to vector<2x32xf32>
    %283 = arith.mulf %280, %267 : vector<2x32xf32>
    %284 = arith.mulf %279, %281 : vector<2x32xf32>
    %285 = arith.addf %283, %284 : vector<2x32xf32>
    %286 = math.tanh %285 : vector<2x32xf32>
    %287 = arith.mulf %282, %286 : vector<2x32xf32>
    %288 = vector.extract_strided_slice %158 {offsets = [14, 0], sizes = [2, 128], strides = [1, 1]} : vector<16x128xf32> to vector<2x128xf32>
    %cst_48 = arith.constant dense<0.000000e+00> : vector<2x128xf32>
    %289 = tpu.matmul %287, %159, %cst_48 {dimension_numbers = #tpu.dot_dimension_numbers<[1], [0], [0], [1], [0, 0, 1, 1], [], []>} : vector<2x32xf32>, vector<32x128xf32>, vector<2x128xf32> -> vector<2x128xf32>
    %290 = arith.addf %288, %289 : vector<2x128xf32>
    %291 = arith.negf %290 : vector<2x128xf32>
    %292 = math.exp %291 : vector<2x128xf32>
    %cst_49 = arith.constant 1.000000e+00 : f32
    %293 = vector.broadcast %cst_49 : f32 to vector<2x128xf32>
    %294 = arith.addf %293, %292 : vector<2x128xf32>
    %295 = arith.divf %293, %294 : vector<2x128xf32>
    %296 = math.tanh %290 : vector<2x128xf32>
    %297 = vector.extract_strided_slice %295 {offsets = [0, 0], sizes = [2, 32], strides = [1, 1]} : vector<2x128xf32> to vector<2x32xf32>
    %298 = vector.extract_strided_slice %295 {offsets = [0, 32], sizes = [2, 32], strides = [1, 1]} : vector<2x128xf32> to vector<2x32xf32>
    %299 = vector.extract_strided_slice %296 {offsets = [0, 64], sizes = [2, 32], strides = [1, 1]} : vector<2x128xf32> to vector<2x32xf32>
    %300 = vector.extract_strided_slice %295 {offsets = [0, 96], sizes = [2, 32], strides = [1, 1]} : vector<2x128xf32> to vector<2x32xf32>
    %301 = arith.mulf %298, %285 : vector<2x32xf32>
    %302 = arith.mulf %297, %299 : vector<2x32xf32>
    %303 = arith.addf %301, %302 : vector<2x32xf32>
    %304 = math.tanh %303 : vector<2x32xf32>
    %305 = arith.mulf %300, %304 : vector<2x32xf32>
    %306 = vector.extract_strided_slice %179 {offsets = [1, 0], sizes = [1, 32], strides = [1, 1]} : vector<2x32xf32> to vector<1x32xf32>
    %307 = vector.extract_strided_slice %197 {offsets = [1, 0], sizes = [1, 32], strides = [1, 1]} : vector<2x32xf32> to vector<1x32xf32>
    %308 = vector.extract_strided_slice %215 {offsets = [1, 0], sizes = [1, 32], strides = [1, 1]} : vector<2x32xf32> to vector<1x32xf32>
    %309 = vector.extract_strided_slice %233 {offsets = [1, 0], sizes = [1, 32], strides = [1, 1]} : vector<2x32xf32> to vector<1x32xf32>
    %310 = vector.extract_strided_slice %251 {offsets = [1, 0], sizes = [1, 32], strides = [1, 1]} : vector<2x32xf32> to vector<1x32xf32>
    %311 = vector.extract_strided_slice %269 {offsets = [1, 0], sizes = [1, 32], strides = [1, 1]} : vector<2x32xf32> to vector<1x32xf32>
    %312 = vector.extract_strided_slice %287 {offsets = [1, 0], sizes = [1, 32], strides = [1, 1]} : vector<2x32xf32> to vector<1x32xf32>
    %313 = vector.extract_strided_slice %305 {offsets = [1, 0], sizes = [1, 32], strides = [1, 1]} : vector<2x32xf32> to vector<1x32xf32>
    %314 = tpu.concatenate %306, %307, %308, %309, %310, %311, %312, %313 in 0 : vector<1x32xf32>, vector<1x32xf32>, vector<1x32xf32>, vector<1x32xf32>, vector<1x32xf32>, vector<1x32xf32>, vector<1x32xf32>, vector<1x32xf32> -> vector<8x32xf32>
    %c0_50 = arith.constant 0 : index
    %c0_51 = arith.constant 0 : index
    %315 = vector.load %arg7[%c0_50, %c0_51] : memref<32x5xf32, #tpu.memory_space<vmem>>, vector<32x5xf32>
    %cst_52 = arith.constant dense<0.000000e+00> : vector<8x5xf32>
    %316 = tpu.matmul %314, %315, %cst_52 {dimension_numbers = #tpu.dot_dimension_numbers<[1], [0], [0], [1], [0, 0, 1, 1], [], []>} : vector<8x32xf32>, vector<32x5xf32>, vector<8x5xf32> -> vector<8x5xf32>
    %c0_53 = arith.constant 0 : index
    %c0_54 = arith.constant 0 : index
    %317 = vector.load %arg8[%c0_53, %c0_54] : memref<1x5xf32, #tpu.memory_space<vmem>>, vector<1x5xf32>
    %318 = vector.broadcast %317 : vector<1x5xf32> to vector<8x5xf32>
    %319 = arith.addf %316, %318 : vector<8x5xf32>
    %c0_55 = arith.constant 0 : index
    %c0_56 = arith.constant 0 : index
    %320 = vector.load %arg9[%c0_55, %c0_56] : memref<8x5xf32, #tpu.memory_space<vmem>>, vector<8x5xf32>
    tpu.vector_store %arg9[%c0_55, %c0_56], %319 {strides = array<i32>} : memref<8x5xf32, #tpu.memory_space<vmem>>, vector<8x5xf32>,
    return
  }
}

</mosaic_0001>

<bundles_post_ra>
// kernel: lstm_model_forward.1
= control target key start
LH: loop header
LB: loop body
LE: loop exit
PB: predicated region body
PF: predicated region fallthrough
CT: control target
= control target key end

     0   :  { %14 = vsyncpa [#allocation3], 0  ;;  %s3153_s0 = inlined_call_operand.vmem [shape: f32[16,4], index: 0, kind: input, shape index: {}]   ;;  %s3154_s1 = inlined_call_operand.hbm [shape: f32[4,128], index: 1, kind: input, shape index: {}]   ;;  %s3155_s2 = inlined_call_operand.vmem [shape: f32[32,128], index: 2, kind: input, shape index: {}]   ;;  %s3156_s3 = inlined_call_operand.hbm [shape: f32[1,128], index: 3, kind: input, shape index: {}]   ;;  %s3157_s4 = inlined_call_operand.vmem [shape: f32[32,128], index: 4, kind: input, shape index: {}]   ;;  %s3158_s5 = inlined_call_operand.hbm [shape: f32[32,128], index: 5, kind: input, shape index: {}]   ;;  %s3159_s6 = inlined_call_operand.hbm [shape: f32[1,128], index: 6, kind: input, shape index: {}]   ;;  %s3160_s7 = inlined_call_operand.vmem [shape: f32[32,5], index: 7, kind: input, shape index: {}]   ;;  %s3161_s8 = inlined_call_operand.hbm [shape: f32[1,5], index: 8, kind: input, shape index: {}]   ;;  %s3162_s9 = inlined_call_operand.hbm [shape: f32[8,5], index: 9, kind: output, shape index: {}]  }
   0x1   :  { %15 = vsyncpa [#allocation6], 0 }
   0x2   :  { %16 = vsyncpa [#allocation9], 0 }
   0x3   :  { %17 = vsyncpa [#allocation4], 0  ;;  %s2716_s30 = smov [#allocation5]   ;;  %s2717_s11 = smov [#allocation8]  }
   0x4   :  { %s38_s10 = sshll.u32 %s2716_s30, 4  ;;  %s62_s12 = sshll.u32 %s2717_s11, 4  ;;  %s39_s10 = int_to_ptr.vmem [resolvable:$true] %s38_s10  ;;  %s63_s12 = int_to_ptr.vmem [resolvable:$true] %s62_s12 }
   0x5   :  { %s2596_s13 = scalar_lea.vmem %s39_s10, 16  ;;  %s2600_s14 = scalar_lea.vmem %s39_s10, 32 }
   0x6   :  { %p2597_p0 = scmp.ne.s32.totalorder %s39_s10, %s2596_s13  ;;  %p2601_p1 = scmp.lt.s32.totalorder %s39_s10, %s39_s10 }
   0x7   :  { %p2602_p2 = scmp.lt.s32.totalorder %s2600_s14, %s2596_s13 }
   0x9   :  { %p2603_p3 = por %p2602_p2, %p2601_p1 }
   0xb   :  { %p2604_p4 = pnand %p2603_p3, %p2597_p0 }
   0xd   :  { %2607 = shalt.err (!%p2604_p4)
}
   0xe   :  { %41 = dma.hbm_to_vmem [thread:$0]  %s3156_s3, 16, %s39_s10, [#allocation6]  }
   0xf   :  { %s2616_s17 = scalar_lea.vmem %s63_s12, 16  ;;  %s2620_s18 = scalar_lea.vmem %s63_s12, 32 }
  0x10   :  { %p2617_p5 = scmp.ne.s32.totalorder %s63_s12, %s2616_s17  ;;  %p2621_p6 = scmp.lt.s32.totalorder %s63_s12, %s63_s12 }
  0x11   :  { %p2622_p7 = scmp.lt.s32.totalorder %s2620_s18, %s2616_s17 }
  0x13   :  { %p2623_p8 = por %p2622_p7, %p2621_p6 }
  0x15   :  { %p2624_p9 = pnand %p2623_p8, %p2617_p5 }
  0x17   :  { %2627 = shalt.err (!%p2624_p9)
}
  0x18   :  { %65 = dma.hbm_to_vmem [thread:$0]  %s3159_s6, 16, %s63_s12, [#allocation9]  }
  0x19   :  { %s2718_s21 = smov [#allocation2]   ;;  %s2719_s23 = smov [#allocation7]  }
  0x1a   :  { %s26_s22 = sshll.u32 %s2718_s21, 4  ;;  %s49_s24 = sshll.u32 %s2719_s23, 4  ;;  %s27_s22 = int_to_ptr.vmem [resolvable:$true] %s26_s22  ;;  %s50_s24 = int_to_ptr.vmem [resolvable:$true] %s49_s24 }
  0x1b   :  { %s2636_s25 = scalar_lea.vmem %s27_s22, 64  ;;  %p2641_p11 = scmp.lt.s32.totalorder %s27_s22, %s27_s22 }
  0x1c   :  { %p2637_p10 = scmp.ne.s32.totalorder %s27_s22, %s2636_s25  ;;  %p2642_p12 = scmp.lt.s32.totalorder %s2636_s25, %s2636_s25 }
  0x1e   :  { %p2643_p13 = por %p2642_p12, %p2641_p11 }
  0x20   :  { %p2644_p0 = pnand %p2643_p13, %p2637_p10 }
  0x22   :  { %2647 = shalt.err (!%p2644_p0)
}
  0x23   :  { %29 = dma.hbm_to_vmem [thread:$0]  %s3154_s1, 64, %s27_s22, [#allocation3]  }
  0x24   :  { %s2656_s27 = scalar_lea.vmem %s50_s24, 512  ;;  %p2661_p2 = scmp.lt.s32.totalorder %s50_s24, %s50_s24 }
  0x25   :  { %p2657_p1 = scmp.ne.s32.totalorder %s50_s24, %s2656_s27  ;;  %p2662_p3 = scmp.lt.s32.totalorder %s2656_s27, %s2656_s27 }
  0x27   :  { %p2663_p4 = por %p2662_p3, %p2661_p2 }
  0x29   :  { %p2664_p5 = pnand %p2663_p4, %p2657_p1 }
  0x2b   :  { %2667 = shalt.err (!%p2664_p5)
}
  0x2c   :  { %s2720_s6 = smov 128   ;;  %s2721_s28 = smov 8  }
  0x2d   :  { %55 = dma.hbm_to_vmem [thread:$0]  %s3158_s5, 512, %s50_s24, [#allocation6], %s2720_s6, %s2720_s6, %s2721_s28  }
  0x2e   :  { %s2722_s10 = smov [#allocation10]  }
  0x2f   :  { %s74_s11 = sshll.u32 %s2722_s10, 4  ;;  %s75_s11 = int_to_ptr.vmem [resolvable:$true] %s74_s11 }
  0x30   :  { %s2676_s12 = scalar_lea.vmem %s75_s11, 16  ;;  %s2680_s13 = scalar_lea.vmem %s75_s11, 32 }
  0x31   :  { %p2677_p6 = scmp.ne.s32.totalorder %s75_s11, %s2676_s12  ;;  %p2681_p7 = scmp.lt.s32.totalorder %s75_s11, %s75_s11 }
  0x32   :  { %p2682_p8 = scmp.lt.s32.totalorder %s2680_s13, %s2676_s12 }
  0x34   :  { %p2683_p9 = por %p2682_p8, %p2681_p7 }
  0x36   :  { %p2684_p10 = pnand %p2683_p9, %p2677_p6 }
  0x38   :  { %2687 = shalt.err (!%p2684_p10)
}
  0x39   :  { %77 = dma.hbm_to_vmem [thread:$0]  %s3161_s8, 16, %s75_s11, [#allocation9]  }
  0x3a   :  { %2708 = dma.done.wait [#allocation3], 64  }
  0x3b   :  { %2709 = vsyncadd [#allocation3], 4294967232 }
  0x3c   :  { %2710 = dma.done.wait [#allocation6], 528  }
  0x3d   :  { %2711 = vsyncadd [#allocation6], 4294966768 }
  0x3e   :  { %2712 = dma.done.wait [#allocation9], 32  }
  0x3f   :  { %2713 = vsyncadd [#allocation9], 4294967264  ;;  %v2723_v0 = vmov 0.0   ;;  %vm2724_vm0 = vmmov 0   ;;  %vm110_vm1 = vcmask 1043456   ;;  %vm103_vm2 = vcmask 31744  }
  0x40   :  { %2250 = vmatprep.subr.mxu1 %v2723_v0  ;;  %2258 = vmatprep.mubr.msk.f32.mxu1 %vm2724_vm0, %v2723_v0  ;;  %v95_v1 = vld [vmem:[#allocation2] sm:$0xf]  ;;  %v2799_v2 = vld [vmem:[%s3155_s2 + $0x18] sm:$0xff]  ;;  %v94_v4 = vld [vmem:[%s3153_s0 + $0x8] sm:$0xff]  ;;  %s2726_s24 = smov 32   ;;  %vm193_vm3 = vcmask 261120  }
  0x41   :  { %v93_v3 = vld [vmem:[%s3153_s0] sm:$0xff]  ;;  %2245 = vmatprep.subr.msk.mxu0 %vm110_vm1, %v95_v1  ;;  %2251 = vmatpush3.msra.mxu1 %v2799_v2  ;;  %v2812_v5 = vld [vmem:[%s3155_s2 + $0x10] sm:$0xff]  ;;  %v2819_v6 = vld [vmem:[%s3155_s2 + $0x8] sm:$0xff]  ;;  %vm1036_vm4 = vcmask 1041408   ;;  %vm1039_vm5 = vcmask 1045504   ;;  %vm1996_vm6 = vcmask 1040384  }
  0x42   :  { %2246 = vmatpush3.msk.msra.mxu0 %vm110_vm1, %v95_v1  ;;  %2247 = vmatprep.mubr.msk.f32.mxu0 %vm103_vm2, %v93_v3  ;;  %v2827_v7 = vld [vmem:[%s3155_s2] sm:$0xff]  ;;  %s2725_s2 = smov 64   ;;  %vm1999_vm7 = vcmask 1042432   ;;  %vm2002_vm8 = vcmask 1044480   ;;  %vm2005_vm9 = vcmask 1046528   ;;  %s2727_s15 = smov [#allocation11]  }
  0x43   :  { %2252 = vmatprep.subr.mxu1 %v2723_v0  ;;  %2248 = vmatmul.mubr.msk.f32.vlgmr.msra.gmra.mxu0 %vm103_vm2, %v94_v4  ;;  %v2112_v8 = vld [vmem:[#allocation5] ss:$0 sm:$0xff]  ;;  %s2101_s8 = sshll.u32 %s2727_s15, 4  ;;  %vm2093_vm10 = vcmask 39936   ;;  %s2102_s8 = int_to_ptr.vmem [resolvable:$true] %s2101_s8 }
  0x44   :  { %2253 = vmatpush3.msra.mxu1 %v2812_v5  ;;  %2261 = vmatprep.subr.mxu0 %v2723_v0  ;;  %p2693_p12 = scmp.lt.s32.totalorder %s2102_s8, %s2102_s8 }
  0x45   :  { %2254 = vmatprep.subr.mxu1 %v2723_v0  ;;  %2262 = vmatpush3.msra.mxu0 %v2799_v2 }
  0x46   :  { %2255 = vmatpush3.msra.mxu1 %v2819_v6  ;;  %2263 = vmatprep.subr.mxu0 %v2723_v0 }
  0x47   :  { %2256 = vmatprep.subr.mxu1 %v2723_v0  ;;  %2264 = vmatpush3.msra.mxu0 %v2812_v5 }
  0x48   :  { %2257 = vmatpush3.msra.mxu1 %v2827_v7  ;;  %2265 = vmatprep.subr.mxu0 %v2723_v0 }
  0x49   :  { %2259 = vmatmul.mubr.f32.vlgmr.msra.gmra.mxu1 %v2723_v0  ;;  %2266 = vmatpush3.msra.mxu0 %v2819_v6 }
  0x4a   :  { %2267 = vmatprep.subr.mxu0 %v2723_v0  ;;  %2269 = vmatprep.mubr.msk.f32.mxu0 %vm2724_vm0, %v2723_v0 }
  0x4b   :  { %2268 = vmatpush3.msra.mxu0 %v2827_v7  ;;  %2272 = vmatprep.subr.mxu1 %v2723_v0 }
  0x4c   :  { %2273 = vmatpush3.msra.mxu1 %v2799_v2  ;;  %2280 = vmatprep.mubr.msk.f32.mxu1 %vm2724_vm0, %v2723_v0 }
  0x4d   :  { %2274 = vmatprep.subr.mxu1 %v2723_v0  ;;  %2283 = vmatprep.subr.mxu0 %v2723_v0 }
  0x4e   :  { %2275 = vmatpush3.msra.mxu1 %v2812_v5 }
  0x4f   :  { %2276 = vmatprep.subr.mxu1 %v2723_v0 }
  0x50   :  { %2277 = vmatpush3.msra.mxu1 %v2819_v6 }
  0x51   :  { %2278 = vmatprep.subr.mxu1 %v2723_v0 }
  0x52   :  { %2279 = vmatpush3.msra.mxu1 %v2827_v7 }
  0x53   :  { %2294 = vmatprep.subr.mxu1 %v2723_v0 }
 0x103   :  { %v2249_v9 = vpop.f32.mrf.mxu0 }
 0x104   :  { %v2854_v10 = vadd.f32 %v2249_v9, %v2112_v8 }
 0x105   :  { %v180_v11 = vpop.f32.mrf.mxu0 }
 0x106   :  { %v2856_v12 = vadd.f32 %v2112_v8, %v180_v11 }
 0x109   :  { %v263_v13 = vpop.f32.mrf.mxu1 }
 0x10a   :  { %v267_v14 = vadd.f32 %v263_v13, %v2856_v12 }
 0x10b   :  { %v2260_v15 = vpop.f32.mrf.mxu1 }
 0x10c   :  { %2460 = vtanh.f32 %v267_v14  ;;  %v2116_v17 = vmul.f32 -1.442695, %v267_v14 }
 0x10e   :  { %2462 = vpow2.f32 %v2116_v17 }
 0x119   :  { %v2461_v16 = vpop.eup %2460 }
 0x11a   :  { %277 = vrot.lane.b32.xlu0 %v2461_v16, %s2725_s2 }
 0x11b   :  { %v2463_v18 = vpop.eup %2462 }
 0x11c   :  { %v271_v19 = vadd.f32 1.0, %v2463_v18 }
 0x11e   :  { %2464 = vrcp.f32 %v271_v19 }
 0x12b   :  { %v2465_v20 = vpop.eup %2464 }
 0x12c   :  { %v275_v23 = vmul.f32 0.0, %v2465_v20 }
 0x18c   :  { %v278_v21 = vpop.permute.xlu0 %277 }
 0x18d   :  { %v280_v22 = vmul.f32 %v2465_v20, %v278_v21 }
 0x18f   :  { %282 = vrot.lane.b32.xlu0 %v280_v22, %s2726_s24 }
 0x201   :  { %v283_v24 = vpop.permute.xlu0 %282 }
 0x202   :  { %v285_v25 = vadd.f32 %v283_v24, %v275_v23 }
 0x204   :  { %2466 = vtanh.f32 %v285_v25  ;;  %v379_v41 = vrot.slane %v285_v25, 6 }
 0x211   :  { %v2467_v26 = vpop.eup %2466 }
 0x212   :  { %288 = vrot.lane.b32.xlu1 %v2467_v26, %s2725_s2 }
 0x284   :  { %v289_v27 = vpop.permute.xlu1 %288 }
 0x285   :  { %v2862_v28 = vmul.f32 %v2465_v20, %v289_v27 }
 0x287   :  { %293 = vrot.lane.b32.xlu1 %v2862_v28, %s2726_s24 }
 0x2f9   :  { %v294_v29 = vpop.permute.xlu1 %293 }
 0x2fa   :  { %2270 = vmatmul.mubr.msk.f32.vlgmr.msra.gmra.mxu0 %vm193_vm3, %v294_v29 }
 0x2fb   :  { %2284 = vmatpush3.msra.mxu0 %v2799_v2  ;;  %2291 = vmatprep.mubr.msk.f32.mxu0 %vm2724_vm0, %v2723_v0 }
 0x2fc   :  { %2285 = vmatprep.subr.mxu0 %v2723_v0 }
 0x2fd   :  { %2286 = vmatpush3.msra.mxu0 %v2812_v5 }
 0x2fe   :  { %2287 = vmatprep.subr.mxu0 %v2723_v0 }
 0x2ff   :  { %2288 = vmatpush3.msra.mxu0 %v2819_v6 }
 0x300   :  { %2289 = vmatprep.subr.mxu0 %v2723_v0 }
 0x301   :  { %2290 = vmatpush3.msra.mxu0 %v2827_v7 }
 0x302   :  { %2305 = vmatprep.subr.mxu0 %v2723_v0 }
 0x3ba   :  { %v363_v30 = vpop.f32.mrf.mxu0 }
 0x3bb   :  { %v368_v31 = vrot.slane %v363_v30, 6 }
 0x3bc   :  { %v2271_v32 = vpop.f32.mrf.mxu0 }
 0x3bd   :  { %v370_v33 = vadd.f32 %v368_v31, %v2856_v12 }
 0x3bf   :  { %2468 = vtanh.f32 %v370_v33  ;;  %v2118_v35 = vmul.f32 -1.442695, %v370_v33 }
 0x3c1   :  { %2470 = vpow2.f32 %v2118_v35 }
 0x3cc   :  { %v2469_v34 = vpop.eup %2468 }
 0x3cd   :  { %383 = vrot.lane.b32.xlu0 %v2469_v34, %s2725_s2 }
 0x3ce   :  { %v2471_v36 = vpop.eup %2470 }
 0x3cf   :  { %v374_v37 = vadd.f32 1.0, %v2471_v36 }
 0x3d1   :  { %2472 = vrcp.f32 %v374_v37 }
 0x3de   :  { %v2473_v38 = vpop.eup %2472 }
 0x3df   :  { %v381_v42 = vmul.f32 %v2473_v38, %v379_v41 }
 0x43f   :  { %v384_v39 = vpop.permute.xlu0 %383 }
 0x440   :  { %v386_v40 = vmul.f32 %v2473_v38, %v384_v39 }
 0x442   :  { %388 = vrot.lane.b32.xlu1 %v386_v40, %s2726_s24 }
 0x4b4   :  { %v389_v43 = vpop.permute.xlu1 %388 }
 0x4b5   :  { %v391_v44 = vadd.f32 %v389_v43, %v381_v42 }
 0x4b7   :  { %2474 = vtanh.f32 %v391_v44  ;;  %v486_v61 = vrot.slane %v391_v44, 6 }
 0x4c4   :  { %v2475_v45 = vpop.eup %2474 }
 0x4c5   :  { %394 = vrot.lane.b32.xlu0 %v2475_v45, %s2725_s2 }
 0x537   :  { %v395_v46 = vpop.permute.xlu0 %394 }
 0x538   :  { %v397_v47 = vmul.f32 %v2473_v38, %v395_v46 }
 0x53a   :  { %v399_v48 = vrot.slane %v397_v47, 2  ;;  %v1037_v9 = vsel %vm1036_vm4, %v2862_v28, %v397_v47 }
 0x53c   :  { %400 = vrot.lane.b32.xlu1 %v399_v48, %s2726_s24 }
 0x5ae   :  { %v401_v49 = vpop.permute.xlu1 %400 }
 0x5af   :  { %2281 = vmatmul.mubr.msk.f32.vlgmr.msra.gmra.mxu1 %vm193_vm3, %v401_v49 }
 0x5b0   :  { %2295 = vmatpush3.msra.mxu1 %v2799_v2  ;;  %2302 = vmatprep.mubr.msk.f32.mxu1 %vm2724_vm0, %v2723_v0 }
 0x5b1   :  { %2296 = vmatprep.subr.mxu1 %v2723_v0 }
 0x5b2   :  { %2297 = vmatpush3.msra.mxu1 %v2812_v5 }
 0x5b3   :  { %2298 = vmatprep.subr.mxu1 %v2723_v0 }
 0x5b4   :  { %2299 = vmatpush3.msra.mxu1 %v2819_v6 }
 0x5b5   :  { %2300 = vmatprep.subr.mxu1 %v2723_v0 }
 0x5b6   :  { %2301 = vmatpush3.msra.mxu1 %v2827_v7 }
 0x5b7   :  { %2316 = vmatprep.subr.mxu1 %v2723_v0 }
 0x66f   :  { %v470_v50 = vpop.f32.mrf.mxu1 }
 0x670   :  { %v475_v51 = vrot.slane %v470_v50, 4 }
 0x671   :  { %v2282_v52 = vpop.f32.mrf.mxu1 }
 0x672   :  { %v477_v53 = vadd.f32 %v475_v51, %v2856_v12 }
 0x674   :  { %2476 = vtanh.f32 %v477_v53  ;;  %v2120_v55 = vmul.f32 -1.442695, %v477_v53 }
 0x676   :  { %2478 = vpow2.f32 %v2120_v55 }
 0x681   :  { %v2477_v54 = vpop.eup %2476 }
 0x682   :  { %490 = vrot.lane.b32.xlu0 %v2477_v54, %s2725_s2 }
 0x683   :  { %v2479_v56 = vpop.eup %2478 }
 0x684   :  { %v481_v57 = vadd.f32 1.0, %v2479_v56 }
 0x686   :  { %2480 = vrcp.f32 %v481_v57 }
 0x693   :  { %v2481_v58 = vpop.eup %2480 }
 0x694   :  { %v488_v62 = vmul.f32 %v2481_v58, %v486_v61 }
 0x6f4   :  { %v491_v59 = vpop.permute.xlu0 %490 }
 0x6f5   :  { %v493_v60 = vmul.f32 %v2481_v58, %v491_v59 }
 0x6f7   :  { %495 = vrot.lane.b32.xlu1 %v493_v60, %s2726_s24 }
 0x769   :  { %v496_v63 = vpop.permute.xlu1 %495 }
 0x76a   :  { %v498_v1 = vadd.f32 %v496_v63, %v488_v62 }
 0x76c   :  { %2482 = vtanh.f32 %v498_v1  ;;  %v593_v26 = vrot.slane %v498_v1, 6 }
 0x779   :  { %v2483_v3 = vpop.eup %2482 }
 0x77a   :  { %501 = vrot.lane.b32.xlu0 %v2483_v3, %s2725_s2 }
 0x7ec   :  { %v502_v4 = vpop.permute.xlu0 %501 }
 0x7ed   :  { %v504_v8 = vmul.f32 %v2481_v58, %v502_v4 }
 0x7ef   :  { %v506_v11 = vrot.slane %v504_v8, 4  ;;  %v1038_v13 = vsel %vm110_vm1, %v1037_v9, %v504_v8 }
 0x7f1   :  { %507 = vrot.lane.b32.xlu1 %v506_v11, %s2726_s24 }
 0x863   :  { %v508_v14 = vpop.permute.xlu1 %507 }
 0x864   :  { %2292 = vmatmul.mubr.msk.f32.vlgmr.msra.gmra.mxu0 %vm193_vm3, %v508_v14 }
 0x865   :  { %2306 = vmatpush3.msra.mxu0 %v2799_v2  ;;  %2313 = vmatprep.mubr.msk.f32.mxu0 %vm2724_vm0, %v2723_v0 }
 0x866   :  { %2307 = vmatprep.subr.mxu0 %v2723_v0 }
 0x867   :  { %2308 = vmatpush3.msra.mxu0 %v2812_v5 }
 0x868   :  { %2309 = vmatprep.subr.mxu0 %v2723_v0 }
 0x869   :  { %2310 = vmatpush3.msra.mxu0 %v2819_v6 }
 0x86a   :  { %2311 = vmatprep.subr.mxu0 %v2723_v0 }
 0x86b   :  { %2312 = vmatpush3.msra.mxu0 %v2827_v7 }
 0x86c   :  { %2327 = vmatprep.subr.mxu0 %v2723_v0 }
 0x924   :  { %v577_v15 = vpop.f32.mrf.mxu0 }
 0x925   :  { %v582_v16 = vrot.slane %v577_v15, 2 }
 0x926   :  { %v2293_v17 = vpop.f32.mrf.mxu0 }
 0x927   :  { %v584_v18 = vadd.f32 %v582_v16, %v2856_v12 }
 0x929   :  { %2484 = vtanh.f32 %v584_v18  ;;  %v2122_v20 = vmul.f32 -1.442695, %v584_v18 }
 0x92b   :  { %2486 = vpow2.f32 %v2122_v20 }
 0x936   :  { %v2485_v19 = vpop.eup %2484 }
 0x937   :  { %597 = vrot.lane.b32.xlu0 %v2485_v19, %s2725_s2 }
 0x938   :  { %v2487_v21 = vpop.eup %2486 }
 0x939   :  { %v588_v22 = vadd.f32 1.0, %v2487_v21 }
 0x93b   :  { %2488 = vrcp.f32 %v588_v22 }
 0x948   :  { %v2489_v23 = vpop.eup %2488 }
 0x949   :  { %v595_v27 = vmul.f32 %v2489_v23, %v593_v26 }
 0x9a9   :  { %v598_v24 = vpop.permute.xlu0 %597 }
 0x9aa   :  { %v600_v25 = vmul.f32 %v2489_v23, %v598_v24 }
 0x9ac   :  { %602 = vrot.lane.b32.xlu1 %v600_v25, %s2726_s24 }
 0xa1e   :  { %v603_v28 = vpop.permute.xlu1 %602 }
 0xa1f   :  { %v605_v29 = vadd.f32 %v603_v28, %v595_v27 }
 0xa21   :  { %2490 = vtanh.f32 %v605_v29  ;;  %v697_v45 = vrot.slane %v605_v29, 6 }
 0xa2e   :  { %v2491_v12 = vpop.eup %2490 }
 0xa2f   :  { %608 = vrot.lane.b32.xlu0 %v2491_v12, %s2725_s2 }
 0xaa1   :  { %v609_v30 = vpop.permute.xlu0 %608 }
 0xaa2   :  { %v611_v31 = vmul.f32 %v2489_v23, %v609_v30 }
 0xaa4   :  { %v613_v32 = vrot.slane %v611_v31, 6  ;;  %v2917_v33 = vsel %vm1039_vm5, %v1038_v13, %v611_v31 }
 0xaa6   :  { %614 = vrot.lane.b32.xlu1 %v613_v32, %s2726_s24 }
 0xb18   :  { %v615_v34 = vpop.permute.xlu1 %614 }
 0xb19   :  { %2303 = vmatmul.mubr.msk.f32.vlgmr.msra.gmra.mxu1 %vm193_vm3, %v615_v34 }
 0xb1a   :  { %2317 = vmatpush3.msra.mxu1 %v2799_v2  ;;  %2324 = vmatprep.mubr.msk.f32.mxu1 %vm2724_vm0, %v2723_v0 }
 0xb1b   :  { %2318 = vmatprep.subr.mxu1 %v2723_v0 }
 0xb1c   :  { %2319 = vmatpush3.msra.mxu1 %v2812_v5 }
 0xb1d   :  { %2320 = vmatprep.subr.mxu1 %v2723_v0 }
 0xb1e   :  { %2321 = vmatpush3.msra.mxu1 %v2819_v6 }
 0xb1f   :  { %2322 = vmatprep.subr.mxu1 %v2723_v0 }
 0xb20   :  { %2323 = vmatpush3.msra.mxu1 %v2827_v7 }
 0xbd9   :  { %v684_v35 = vpop.f32.mrf.mxu1 }
 0xbda   :  { %v688_v36 = vadd.f32 %v684_v35, %v2854_v10 }
 0xbdb   :  { %v2304_v37 = vpop.f32.mrf.mxu1 }
 0xbdc   :  { %2492 = vtanh.f32 %v688_v36  ;;  %v2124_v39 = vmul.f32 -1.442695, %v688_v36 }
 0xbde   :  { %2494 = vpow2.f32 %v2124_v39 }
 0xbe9   :  { %v2493_v38 = vpop.eup %2492 }
 0xbea   :  { %701 = vrot.lane.b32.xlu0 %v2493_v38, %s2725_s2 }
 0xbeb   :  { %v2495_v40 = vpop.eup %2494 }
 0xbec   :  { %v692_v41 = vadd.f32 1.0, %v2495_v40 }
 0xbee   :  { %2496 = vrcp.f32 %v692_v41 }
 0xbfb   :  { %v2497_v42 = vpop.eup %2496 }
 0xbfc   :  { %v699_v46 = vmul.f32 %v2497_v42, %v697_v45 }
 0xc5c   :  { %v702_v43 = vpop.permute.xlu0 %701 }
 0xc5d   :  { %v704_v44 = vmul.f32 %v2497_v42, %v702_v43 }
 0xc5f   :  { %706 = vrot.lane.b32.xlu1 %v704_v44, %s2726_s24 }
 0xcd1   :  { %v707_v47 = vpop.permute.xlu1 %706 }
 0xcd2   :  { %v709_v48 = vadd.f32 %v707_v47, %v699_v46 }
 0xcd4   :  { %2498 = vtanh.f32 %v709_v48 }
 0xce1   :  { %v2499_v49 = vpop.eup %2498 }
 0xce2   :  { %712 = vrot.lane.b32.xlu0 %v2499_v49, %s2725_s2  ;;  %v1047_v49 = vld [vmem:[%s3157_s4 + $0x18] sm:$0xff] }
 0xce3   :  { %2338 = vmatprep.subr.mxu1 %v1047_v49 }
 0xd54   :  { %v713_v50 = vpop.permute.xlu0 %712 }
 0xd55   :  { %v2934_v51 = vmul.f32 %v2497_v42, %v713_v50  ;;  %v1046_v50 = vld [vmem:[%s3157_s4 + $0x10] sm:$0xff] }
 0xd57   :  { %717 = vrot.lane.b32.xlu1 %v2934_v51, %s2726_s24 }
 0xdc9   :  { %v718_v52 = vpop.permute.xlu1 %717 }
 0xdca   :  { %2314 = vmatmul.mubr.msk.f32.vlgmr.msra.gmra.mxu0 %vm193_vm3, %v718_v52  ;;  %v1045_v52 = vld [vmem:[%s3157_s4 + $0x8] sm:$0xff] }
 0xdcb   :  { %2328 = vmatpush3.msra.mxu0 %v2799_v2  ;;  %2335 = vmatprep.mubr.msk.f32.mxu0 %vm2724_vm0, %v2723_v0 }
 0xdcc   :  { %2329 = vmatprep.subr.mxu0 %v2723_v0 }
 0xdcd   :  { %2330 = vmatpush3.msra.mxu0 %v2812_v5 }
 0xdce   :  { %2331 = vmatprep.subr.mxu0 %v2723_v0 }
 0xdcf   :  { %2332 = vmatpush3.msra.mxu0 %v2819_v6 }
 0xdd0   :  { %2333 = vmatprep.subr.mxu0 %v2723_v0 }
 0xdd1   :  { %2334 = vmatpush3.msra.mxu0 %v2827_v7  ;;  %v803_v7 = vrot.slane %v709_v48, 6 }
 0xdd2   :  { %2349 = vmatprep.subr.mxu0 %v2723_v0 }
 0xe8a   :  { %v787_v53 = vpop.f32.mrf.mxu0 }
 0xe8b   :  { %v792_v54 = vrot.slane %v787_v53, 6  ;;  %v2989_v53 = vld [vmem:[#allocation7 + $0x8] sm:$0xff] }
 0xe8c   :  { %v2315_v2 = vpop.f32.mrf.mxu0 }
 0xe8d   :  { %v794_v55 = vadd.f32 %v792_v54, %v2854_v10  ;;  %v1044_v54 = vld [vmem:[%s3157_s4] sm:$0xff] }
 0xe8f   :  { %2500 = vtanh.f32 %v794_v55  ;;  %v2126_v5 = vmul.f32 -1.442695, %v794_v55  ;;  %v3000_v55 = vld [vmem:[#allocation7] sm:$0xff] }
 0xe91   :  { %2502 = vpow2.f32 %v2126_v5 }
 0xe9c   :  { %v2501_v56 = vpop.eup %2500 }
 0xe9d   :  { %807 = vrot.lane.b32.xlu0 %v2501_v56, %s2725_s2 }
 0xe9e   :  { %v2503_v57 = vpop.eup %2502 }
 0xe9f   :  { %v798_v58 = vadd.f32 1.0, %v2503_v57 }
 0xea1   :  { %2504 = vrcp.f32 %v798_v58 }
 0xeae   :  { %v2505_v6 = vpop.eup %2504 }
 0xeaf   :  { %v805_v61 = vmul.f32 %v2505_v6, %v803_v7 }
 0xf0f   :  { %v808_v59 = vpop.permute.xlu0 %807 }
 0xf10   :  { %v810_v60 = vmul.f32 %v2505_v6, %v808_v59 }
 0xf12   :  { %812 = vrot.lane.b32.xlu1 %v810_v60, %s2726_s24  ;;  %v2131_v60 = vld [vmem:[#allocation8] ss:$0 sm:$0xff] }
 0xf84   :  { %v813_v62 = vpop.permute.xlu1 %812 }
 0xf85   :  { %v815_v63 = vadd.f32 %v813_v62, %v805_v61 }
 0xf87   :  { %2506 = vtanh.f32 %v815_v63  ;;  %v910_v23 = vrot.slane %v815_v63, 6 }
 0xf94   :  { %v2507_v1 = vpop.eup %2506 }
 0xf95   :  { %818 = vrot.lane.b32.xlu0 %v2507_v1, %s2725_s2 }
0x1007   :  { %v819_v3 = vpop.permute.xlu0 %818 }
0x1008   :  { %v821_v4 = vmul.f32 %v2505_v6, %v819_v3 }
0x100a   :  { %v823_v8 = vrot.slane %v821_v4, 2  ;;  %v1041_v12 = vsel %vm1036_vm4, %v2934_v51, %v821_v4  ;;  %v2980_v51 = vld [vmem:[#allocation7 + $0x18] sm:$0xff] }
0x100c   :  { %824 = vrot.lane.b32.xlu1 %v823_v8, %s2726_s24 }
0x107e   :  { %v825_v9 = vpop.permute.xlu1 %824 }
0x107f   :  { %2325 = vmatmul.mubr.msk.f32.vlgmr.msra.gmra.mxu1 %vm193_vm3, %v825_v9 }
0x1080   :  { %2339 = vmatpush3.msra.mxu1 %v1047_v49 }
0x1081   :  { %2340 = vmatprep.subr.mxu1 %v1046_v50 }
0x1082   :  { %2341 = vmatpush3.msra.mxu1 %v1046_v50 }
0x1083   :  { %2342 = vmatprep.subr.mxu1 %v1045_v52 }
0x1084   :  { %2343 = vmatpush3.msra.mxu1 %v1045_v52 }
0x1085   :  { %2344 = vmatprep.subr.mxu1 %v1044_v54 }
0x1086   :  { %2345 = vmatpush3.msra.mxu1 %v1044_v54 }
0x1087   :  { %2360 = vmatprep.subr.mxu1 %v2723_v0 }
0x113f   :  { %v894_v11 = vpop.f32.mrf.mxu1 }
0x1140   :  { %v899_v13 = vrot.slane %v894_v11, 4 }
0x1141   :  { %v2326_v14 = vpop.f32.mrf.mxu1 }
0x1142   :  { %v901_v15 = vadd.f32 %v899_v13, %v2854_v10 }
0x1144   :  { %2508 = vtanh.f32 %v901_v15  ;;  %v2128_v17 = vmul.f32 -1.442695, %v901_v15 }
0x1146   :  { %2510 = vpow2.f32 %v2128_v17 }
0x1151   :  { %v2509_v16 = vpop.eup %2508 }
0x1152   :  { %914 = vrot.lane.b32.xlu0 %v2509_v16, %s2725_s2 }
0x1153   :  { %v2511_v18 = vpop.eup %2510 }
0x1154   :  { %v905_v19 = vadd.f32 1.0, %v2511_v18 }
0x1156   :  { %2512 = vrcp.f32 %v905_v19 }
0x1163   :  { %v2513_v20 = vpop.eup %2512 }
0x1164   :  { %v912_v24 = vmul.f32 %v2513_v20, %v910_v23 }
0x11c4   :  { %v915_v21 = vpop.permute.xlu0 %914 }
0x11c5   :  { %v917_v22 = vmul.f32 %v2513_v20, %v915_v21 }
0x11c7   :  { %919 = vrot.lane.b32.xlu1 %v917_v22, %s2726_s24 }
0x1239   :  { %v920_v25 = vpop.permute.xlu1 %919 }
0x123a   :  { %v922_v26 = vadd.f32 %v920_v25, %v912_v24 }
0x123c   :  { %2514 = vtanh.f32 %v922_v26  ;;  %v1017_v45 = vrot.slane %v922_v26, 6 }
0x1249   :  { %v2515_v27 = vpop.eup %2514 }
0x124a   :  { %925 = vrot.lane.b32.xlu0 %v2515_v27, %s2725_s2 }
0x12bc   :  { %v926_v28 = vpop.permute.xlu0 %925 }
0x12bd   :  { %v928_v29 = vmul.f32 %v2513_v20, %v926_v28 }
0x12bf   :  { %v930_v30 = vrot.slane %v928_v29, 4  ;;  %v2962_v31 = vsel %vm110_vm1, %v1041_v12, %v928_v29 }
0x12c1   :  { %931 = vrot.lane.b32.xlu1 %v930_v30, %s2726_s24 }
0x1333   :  { %v932_v32 = vpop.permute.xlu1 %931 }
0x1334   :  { %2336 = vmatmul.mubr.msk.f32.vlgmr.msra.gmra.mxu0 %vm193_vm3, %v932_v32 }
0x1335   :  { %2357 = vmatprep.mubr.msk.f32.mxu0 %vm2724_vm0, %v2723_v0  ;;  %2350 = vmatpush3.msra.mxu0 %v2980_v51 }
0x1336   :  { %2351 = vmatprep.subr.mxu0 %v2723_v0 }
0x13f4   :  { %v1001_v34 = vpop.f32.mrf.mxu0 }
0x13f5   :  { %v1006_v35 = vrot.slane %v1001_v34, 2 }
0x13f6   :  { %v2337_v36 = vpop.f32.mrf.mxu0 }
0x13f7   :  { %v1008_v37 = vadd.f32 %v1006_v35, %v2854_v10 }
0x13f9   :  { %2516 = vtanh.f32 %v1008_v37  ;;  %v2130_v39 = vmul.f32 -1.442695, %v1008_v37 }
0x13fb   :  { %2518 = vpow2.f32 %v2130_v39 }
0x1406   :  { %v2517_v38 = vpop.eup %2516 }
0x1407   :  { %1021 = vrot.lane.b32.xlu0 %v2517_v38, %s2725_s2 }
0x1408   :  { %v2519_v40 = vpop.eup %2518 }
0x1409   :  { %v1012_v41 = vadd.f32 1.0, %v2519_v40 }
0x140b   :  { %2520 = vrcp.f32 %v1012_v41 }
0x1418   :  { %v2521_v42 = vpop.eup %2520 }
0x1419   :  { %v1019_v46 = vmul.f32 %v2521_v42, %v1017_v45 }
0x1479   :  { %v1022_v43 = vpop.permute.xlu0 %1021 }
0x147a   :  { %v1024_v44 = vmul.f32 %v2521_v42, %v1022_v43 }
0x147c   :  { %1026 = vrot.lane.b32.xlu1 %v1024_v44, %s2726_s24 }
0x1480   :  { %1057 = vrot.lane.b32.xlu1 %v2917_v33, %s2726_s24  ;;  %v2983_v33 = vld [vmem:[#allocation7 + $0x10] sm:$0xff] }
0x1481   :  { %2352 = vmatpush3.msra.mxu0 %v2983_v33 }
0x1482   :  { %2353 = vmatprep.subr.mxu0 %v2723_v0 }
0x1483   :  { %2354 = vmatpush3.msra.mxu0 %v2989_v53 }
0x1484   :  { %2355 = vmatprep.subr.mxu0 %v2723_v0 }
0x1485   :  { %2356 = vmatpush3.msra.mxu0 %v3000_v55 }
0x1486   :  { %2358 = vmatmul.mubr.f32.vlgmr.msra.gmra.mxu0 %v2723_v0  ;;  %2371 = vmatprep.subr.mxu0 %v2723_v0 }
0x1487   :  { %2372 = vmatpush3.msra.mxu0 %v2980_v51  ;;  %2379 = vmatprep.mubr.msk.f32.mxu0 %vm2724_vm0, %v2723_v0 }
0x1488   :  { %2373 = vmatprep.subr.mxu0 %v2723_v0 }
0x1489   :  { %2374 = vmatpush3.msra.mxu0 %v2983_v33 }
0x148a   :  { %2375 = vmatprep.subr.mxu0 %v2723_v0 }
0x148b   :  { %2376 = vmatpush3.msra.mxu0 %v2989_v53 }
0x148c   :  { %2377 = vmatprep.subr.mxu0 %v2723_v0 }
0x148d   :  { %2378 = vmatpush3.msra.mxu0 %v3000_v55 }
0x148e   :  { %2393 = vmatprep.subr.mxu0 %v2723_v0 }
0x14ee   :  { %v1027_v10 = vpop.permute.xlu1 %1026 }
0x14ef   :  { %v1029_v47 = vadd.f32 %v1027_v10, %v1019_v46 }
0x14f1   :  { %2522 = vtanh.f32 %v1029_v47 }
0x14f2   :  { %v1058_v48 = vpop.permute.xlu1 %1057 }
0x14f3   :  { %2346 = vmatprep.mubr.msk.f32.mxu1 %vm193_vm3, %v1058_v48 }
0x14fe   :  { %v2523_v2 = vpop.eup %2522 }
0x14ff   :  { %1032 = vrot.lane.b32.xlu0 %v2523_v2, %s2725_s2 }
0x1546   :  { %v1210_v6 = vpop.f32.mrf.mxu0 }
0x1548   :  { %v2359_v59 = vpop.f32.mrf.mxu0 }
0x1571   :  { %v1033_v56 = vpop.permute.xlu0 %1032 }
0x1572   :  { %v1035_v5 = vmul.f32 %v2521_v42, %v1033_v56 }
0x1574   :  { %v1043_v57 = vsel %vm1039_vm5, %v2962_v31, %v1035_v5 }
0x1575   :  { %1059 = vrot.lane.b32.xlu0 %v1043_v57, %s2726_s24 }
0x15e7   :  { %v1060_v58 = vpop.permute.xlu0 %1059 }
0x15e8   :  { %2347 = vmatmul.mubr.msk.f32.vlgmr.msra.gmra.mxu1 %vm193_vm3, %v1060_v58 }
0x15e9   :  { %2361 = vmatpush3.msra.mxu1 %v2980_v51  ;;  %2368 = vmatprep.mubr.msk.f32.mxu1 %vm2724_vm0, %v2723_v0 }
0x15ea   :  { %2362 = vmatprep.subr.mxu1 %v2723_v0 }
0x15eb   :  { %2363 = vmatpush3.msra.mxu1 %v2983_v33 }
0x15ec   :  { %2364 = vmatprep.subr.mxu1 %v2723_v0 }
0x15ed   :  { %2365 = vmatpush3.msra.mxu1 %v2989_v53 }
0x15ee   :  { %2366 = vmatprep.subr.mxu1 %v2723_v0 }
0x15ef   :  { %2367 = vmatpush3.msra.mxu1 %v3000_v55 }
0x15f0   :  { %2382 = vmatprep.subr.mxu1 %v2723_v0 }
0x16a8   :  { %v2348_v7 = vpop.f32.mrf.mxu1 }
0x16a9   :  { %v3029_v61 = vadd.f32 %v2348_v7, %v2131_v60 }
0x16aa   :  { %v1131_v62 = vpop.f32.mrf.mxu1 }
0x16ab   :  { %v3031_v63 = vadd.f32 %v2131_v60, %v1131_v62 }
0x16ad   :  { %v1214_v1 = vadd.f32 %v1210_v6, %v3031_v63 }
0x16af   :  { %2524 = vtanh.f32 %v1214_v1  ;;  %v2134_v4 = vmul.f32 -1.442695, %v1214_v1 }
0x16b1   :  { %2526 = vpow2.f32 %v2134_v4 }
0x16bc   :  { %v2525_v3 = vpop.eup %2524 }
0x16bd   :  { %1224 = vrot.lane.b32.xlu1 %v2525_v3, %s2725_s2 }
0x16be   :  { %v2527_v8 = vpop.eup %2526 }
0x16bf   :  { %v1218_v9 = vadd.f32 1.0, %v2527_v8 }
0x16c1   :  { %2528 = vrcp.f32 %v1218_v9 }
0x16ce   :  { %v2529_v11 = vpop.eup %2528 }
0x16cf   :  { %v1222_v15 = vmul.f32 0.0, %v2529_v11 }
0x172f   :  { %v1225_v13 = vpop.permute.xlu1 %1224 }
0x1730   :  { %v1227_v14 = vmul.f32 %v2529_v11, %v1225_v13 }
0x1732   :  { %1229 = vrot.lane.b32.xlu0 %v1227_v14, %s2726_s24 }
0x17a4   :  { %v1230_v16 = vpop.permute.xlu0 %1229 }
0x17a5   :  { %v1232_v17 = vadd.f32 %v1230_v16, %v1222_v15 }
0x17a7   :  { %2530 = vtanh.f32 %v1232_v17  ;;  %v1326_v32 = vrot.slane %v1232_v17, 6 }
0x17b4   :  { %v2531_v18 = vpop.eup %2530 }
0x17b5   :  { %1235 = vrot.lane.b32.xlu1 %v2531_v18, %s2725_s2 }
0x1827   :  { %v1236_v19 = vpop.permute.xlu1 %1235 }
0x1828   :  { %v1238_v20 = vmul.f32 %v2529_v11, %v1236_v19 }
0x182a   :  { %1240 = vrot.lane.b32.xlu0 %v1238_v20, %s2726_s24  ;;  %v1983_v40 = vrot.slane %v1238_v20, 1 }
0x189c   :  { %v1241_v21 = vpop.permute.xlu0 %1240 }
0x189d   :  { %2369 = vmatmul.mubr.msk.f32.vlgmr.msra.gmra.mxu1 %vm193_vm3, %v1241_v21 }
0x189e   :  { %2383 = vmatpush3.msra.mxu1 %v2980_v51  ;;  %2390 = vmatprep.mubr.msk.f32.mxu1 %vm2724_vm0, %v2723_v0 }
0x189f   :  { %2384 = vmatprep.subr.mxu1 %v2723_v0 }
0x18a0   :  { %2385 = vmatpush3.msra.mxu1 %v2983_v33 }
0x18a1   :  { %2386 = vmatprep.subr.mxu1 %v2723_v0 }
0x18a2   :  { %2387 = vmatpush3.msra.mxu1 %v2989_v53 }
0x18a3   :  { %2388 = vmatprep.subr.mxu1 %v2723_v0 }
0x18a4   :  { %2389 = vmatpush3.msra.mxu1 %v3000_v55 }
0x18a5   :  { %2404 = vmatprep.subr.mxu1 %v2723_v0 }
0x195d   :  { %v1310_v22 = vpop.f32.mrf.mxu1 }
0x195e   :  { %v1315_v23 = vrot.slane %v1310_v22, 6 }
0x195f   :  { %v2370_v24 = vpop.f32.mrf.mxu1 }
0x1960   :  { %v1317_v25 = vadd.f32 %v1315_v23, %v3031_v63 }
0x1962   :  { %2532 = vtanh.f32 %v1317_v25  ;;  %v2136_v27 = vmul.f32 -1.442695, %v1317_v25 }
0x1964   :  { %2534 = vpow2.f32 %v2136_v27 }
0x196f   :  { %v2533_v26 = vpop.eup %2532 }
0x1970   :  { %1330 = vrot.lane.b32.xlu1 %v2533_v26, %s2725_s2 }
0x1971   :  { %v2535_v28 = vpop.eup %2534 }
0x1972   :  { %v1321_v29 = vadd.f32 1.0, %v2535_v28 }
0x1974   :  { %2536 = vrcp.f32 %v1321_v29 }
0x1981   :  { %v2537_v12 = vpop.eup %2536 }
0x1982   :  { %v1328_v34 = vmul.f32 %v2537_v12, %v1326_v32 }
0x19e2   :  { %v1331_v30 = vpop.permute.xlu1 %1330 }
0x19e3   :  { %v1333_v31 = vmul.f32 %v2537_v12, %v1331_v30 }
0x19e5   :  { %1335 = vrot.lane.b32.xlu0 %v1333_v31, %s2726_s24 }
0x1a57   :  { %v1336_v35 = vpop.permute.xlu0 %1335 }
0x1a58   :  { %v1338_v36 = vadd.f32 %v1336_v35, %v1328_v34 }
0x1a5a   :  { %2538 = vtanh.f32 %v1338_v36  ;;  %v1433_v56 = vrot.slane %v1338_v36, 6 }
0x1a67   :  { %v2539_v37 = vpop.eup %2538 }
0x1a68   :  { %1341 = vrot.lane.b32.xlu1 %v2539_v37, %s2725_s2 }
0x1ada   :  { %v1342_v38 = vpop.permute.xlu1 %1341 }
0x1adb   :  { %v1344_v39 = vmul.f32 %v2537_v12, %v1342_v38 }
0x1add   :  { %v1346_v41 = vrot.slane %v1344_v39, 2 }
0x1adf   :  { %v1997_v42 = vsel %vm1996_vm6, %v1983_v40, %v1346_v41  ;;  %1347 = vrot.lane.b32.xlu0 %v1346_v41, %s2726_s24 }
0x1b51   :  { %v1348_v43 = vpop.permute.xlu0 %1347 }
0x1b52   :  { %2380 = vmatmul.mubr.msk.f32.vlgmr.msra.gmra.mxu0 %vm193_vm3, %v1348_v43 }
0x1b53   :  { %2394 = vmatpush3.msra.mxu0 %v2980_v51  ;;  %2401 = vmatprep.mubr.msk.f32.mxu0 %vm2724_vm0, %v2723_v0 }
0x1b54   :  { %2395 = vmatprep.subr.mxu0 %v2723_v0 }
0x1b55   :  { %2396 = vmatpush3.msra.mxu0 %v2983_v33 }
0x1b56   :  { %2397 = vmatprep.subr.mxu0 %v2723_v0 }
0x1b57   :  { %2398 = vmatpush3.msra.mxu0 %v2989_v53 }
0x1b58   :  { %2399 = vmatprep.subr.mxu0 %v2723_v0 }
0x1b59   :  { %2400 = vmatpush3.msra.mxu0 %v3000_v55 }
0x1b5a   :  { %2415 = vmatprep.subr.mxu0 %v2723_v0 }
0x1c12   :  { %v1417_v44 = vpop.f32.mrf.mxu0 }
0x1c13   :  { %v1422_v45 = vrot.slane %v1417_v44, 4 }
0x1c14   :  { %v2381_v46 = vpop.f32.mrf.mxu0 }
0x1c15   :  { %v1424_v10 = vadd.f32 %v1422_v45, %v3031_v63 }
0x1c17   :  { %2540 = vtanh.f32 %v1424_v10  ;;  %v2138_v48 = vmul.f32 -1.442695, %v1424_v10 }
0x1c19   :  { %2542 = vpow2.f32 %v2138_v48 }
0x1c24   :  { %v2541_v47 = vpop.eup %2540 }
0x1c25   :  { %1437 = vrot.lane.b32.xlu1 %v2541_v47, %s2725_s2 }
0x1c26   :  { %v2543_v49 = vpop.eup %2542 }
0x1c27   :  { %v1428_v50 = vadd.f32 1.0, %v2543_v49 }
0x1c29   :  { %2544 = vrcp.f32 %v1428_v50 }
0x1c36   :  { %v2545_v52 = vpop.eup %2544 }
0x1c37   :  { %v1435_v5 = vmul.f32 %v2545_v52, %v1433_v56 }
0x1c97   :  { %v1438_v54 = vpop.permute.xlu1 %1437 }
0x1c98   :  { %v1440_v2 = vmul.f32 %v2545_v52, %v1438_v54 }
0x1c9a   :  { %1442 = vrot.lane.b32.xlu0 %v1440_v2, %s2726_s24 }
0x1d0c   :  { %v1443_v57 = vpop.permute.xlu0 %1442 }
0x1d0d   :  { %v1445_v58 = vadd.f32 %v1443_v57, %v1435_v5 }
0x1d0f   :  { %2546 = vtanh.f32 %v1445_v58  ;;  %v1540_v20 = vrot.slane %v1445_v58, 6 }
0x1d1c   :  { %v2547_v6 = vpop.eup %2546 }
0x1d1d   :  { %1448 = vrot.lane.b32.xlu1 %v2547_v6, %s2725_s2 }
0x1d8f   :  { %v1449_v59 = vpop.permute.xlu1 %1448 }
0x1d90   :  { %v1451_v60 = vmul.f32 %v2545_v52, %v1449_v59 }
0x1d92   :  { %v1453_v7 = vrot.slane %v1451_v60, 4  ;;  %v1986_v62 = vrot.slane %v1451_v60, 3 }
0x1d94   :  { %v1998_v1 = vsel %vm1036_vm4, %v1997_v42, %v1986_v62  ;;  %1454 = vrot.lane.b32.xlu0 %v1453_v7, %s2726_s24 }
0x1e06   :  { %v1455_v3 = vpop.permute.xlu0 %1454 }
0x1e07   :  { %2391 = vmatmul.mubr.msk.f32.vlgmr.msra.gmra.mxu1 %vm193_vm3, %v1455_v3 }
0x1e08   :  { %2405 = vmatpush3.msra.mxu1 %v2980_v51  ;;  %2412 = vmatprep.mubr.msk.f32.mxu1 %vm2724_vm0, %v2723_v0 }
0x1e09   :  { %2406 = vmatprep.subr.mxu1 %v2723_v0 }
0x1e0a   :  { %2407 = vmatpush3.msra.mxu1 %v2983_v33 }
0x1e0b   :  { %2408 = vmatprep.subr.mxu1 %v2723_v0 }
0x1e0c   :  { %2409 = vmatpush3.msra.mxu1 %v2989_v53 }
0x1e0d   :  { %2410 = vmatprep.subr.mxu1 %v2723_v0 }
0x1e0e   :  { %2411 = vmatpush3.msra.mxu1 %v3000_v55 }
0x1e0f   :  { %2426 = vmatprep.subr.mxu1 %v2723_v0 }
0x1ec7   :  { %v1524_v4 = vpop.f32.mrf.mxu1 }
0x1ec8   :  { %v1529_v8 = vrot.slane %v1524_v4, 2 }
0x1ec9   :  { %v2392_v9 = vpop.f32.mrf.mxu1 }
0x1eca   :  { %v1531_v11 = vadd.f32 %v1529_v8, %v3031_v63 }
0x1ecc   :  { %2548 = vtanh.f32 %v1531_v11  ;;  %v2140_v14 = vmul.f32 -1.442695, %v1531_v11 }
0x1ece   :  { %2550 = vpow2.f32 %v2140_v14 }
0x1ed9   :  { %v2549_v13 = vpop.eup %2548 }
0x1eda   :  { %1544 = vrot.lane.b32.xlu1 %v2549_v13, %s2725_s2 }
0x1edb   :  { %v2551_v15 = vpop.eup %2550 }
0x1edc   :  { %v1535_v16 = vadd.f32 1.0, %v2551_v15 }
0x1ede   :  { %2552 = vrcp.f32 %v1535_v16 }
0x1eeb   :  { %v2553_v17 = vpop.eup %2552 }
0x1eec   :  { %v1542_v21 = vmul.f32 %v2553_v17, %v1540_v20 }
0x1f4c   :  { %v1545_v18 = vpop.permute.xlu1 %1544 }
0x1f4d   :  { %v1547_v19 = vmul.f32 %v2553_v17, %v1545_v18 }
0x1f4f   :  { %1549 = vrot.lane.b32.xlu0 %v1547_v19, %s2726_s24 }
0x1fc1   :  { %v1550_v22 = vpop.permute.xlu0 %1549 }
0x1fc2   :  { %v1552_v23 = vadd.f32 %v1550_v22, %v1542_v21 }
0x1fc4   :  { %2554 = vtanh.f32 %v1552_v23  ;;  %v1644_v40 = vrot.slane %v1552_v23, 6 }
0x1fd1   :  { %v2555_v63 = vpop.eup %2554 }
0x1fd2   :  { %1555 = vrot.lane.b32.xlu1 %v2555_v63, %s2725_s2 }
0x2044   :  { %v1556_v24 = vpop.permute.xlu1 %1555 }
0x2045   :  { %v1558_v25 = vmul.f32 %v2553_v17, %v1556_v24 }
0x2047   :  { %v1560_v26 = vrot.slane %v1558_v25, 6  ;;  %v1988_v27 = vrot.slane %v1558_v25, 4 }
0x2049   :  { %v2000_v28 = vsel %vm1999_vm7, %v1998_v1, %v1988_v27  ;;  %1561 = vrot.lane.b32.xlu0 %v1560_v26, %s2726_s24 }
0x20bb   :  { %v1562_v29 = vpop.permute.xlu0 %1561 }
0x20bc   :  { %2402 = vmatmul.mubr.msk.f32.vlgmr.msra.gmra.mxu0 %vm193_vm3, %v1562_v29 }
0x20bd   :  { %2416 = vmatpush3.msra.mxu0 %v2980_v51  ;;  %2423 = vmatprep.mubr.msk.f32.mxu0 %vm2724_vm0, %v2723_v0 }
0x20be   :  { %2417 = vmatprep.subr.mxu0 %v2723_v0 }
0x20bf   :  { %2418 = vmatpush3.msra.mxu0 %v2983_v33 }
0x20c0   :  { %2419 = vmatprep.subr.mxu0 %v2723_v0 }
0x20c1   :  { %2420 = vmatpush3.msra.mxu0 %v2989_v53 }
0x20c2   :  { %2421 = vmatprep.subr.mxu0 %v2723_v0 }
0x20c3   :  { %2422 = vmatpush3.msra.mxu0 %v3000_v55 }
0x20c4   :  { %2437 = vmatprep.subr.mxu0 %v2723_v0 }
0x217c   :  { %v1631_v12 = vpop.f32.mrf.mxu0 }
0x217d   :  { %v1635_v30 = vadd.f32 %v1631_v12, %v3029_v61 }
0x217e   :  { %v2403_v31 = vpop.f32.mrf.mxu0 }
0x217f   :  { %2556 = vtanh.f32 %v1635_v30  ;;  %v2142_v34 = vmul.f32 -1.442695, %v1635_v30 }
0x2181   :  { %2558 = vpow2.f32 %v2142_v34 }
0x218c   :  { %v2557_v32 = vpop.eup %2556 }
0x218d   :  { %1648 = vrot.lane.b32.xlu1 %v2557_v32, %s2725_s2 }
0x218e   :  { %v2559_v35 = vpop.eup %2558 }
0x218f   :  { %v1639_v36 = vadd.f32 1.0, %v2559_v35 }
0x2191   :  { %2560 = vrcp.f32 %v1639_v36 }
0x219e   :  { %v2561_v37 = vpop.eup %2560 }
0x219f   :  { %v1646_v41 = vmul.f32 %v2561_v37, %v1644_v40 }
0x21ff   :  { %v1649_v38 = vpop.permute.xlu1 %1648 }
0x2200   :  { %v1651_v39 = vmul.f32 %v2561_v37, %v1649_v38 }
0x2202   :  { %1653 = vrot.lane.b32.xlu0 %v1651_v39, %s2726_s24 }
0x2274   :  { %v1654_v42 = vpop.permute.xlu0 %1653 }
0x2275   :  { %v1656_v43 = vadd.f32 %v1654_v42, %v1646_v41 }
0x2277   :  { %2562 = vtanh.f32 %v1656_v43 }
0x2284   :  { %v2563_v44 = vpop.eup %2562 }
0x2285   :  { %1659 = vrot.lane.b32.xlu1 %v2563_v44, %s2725_s2 }
0x22f7   :  { %v1660_v45 = vpop.permute.xlu1 %1659 }
0x22f8   :  { %v1662_v46 = vmul.f32 %v2561_v37, %v1660_v45 }
0x22fa   :  { %v1990_v10 = vrot.slane %v1662_v46, 5  ;;  %1664 = vrot.lane.b32.xlu0 %v1662_v46, %s2726_s24 }
0x22fc   :  { %v2001_v47 = vsel %vm110_vm1, %v2000_v28, %v1990_v10  ;;  %v2009_v10 = vld [vmem:[%s3160_s7 + $0x10] sm:$0xff] }
0x236c   :  { %v1665_v48 = vpop.permute.xlu0 %1664 }
0x236d   :  { %2413 = vmatmul.mubr.msk.f32.vlgmr.msra.gmra.mxu1 %vm193_vm3, %v1665_v48  ;;  %v2007_v48 = vld [vmem:[%s3160_s7] sm:$0xff] }
0x236e   :  { %2427 = vmatpush3.msra.mxu1 %v2980_v51  ;;  %2434 = vmatprep.mubr.msk.f32.mxu1 %vm2724_vm0, %v2723_v0 }
0x236f   :  { %2428 = vmatprep.subr.mxu1 %v2723_v0 }
0x2370   :  { %2429 = vmatpush3.msra.mxu1 %v2983_v33 }
0x2371   :  { %2430 = vmatprep.subr.mxu1 %v2723_v0 }
0x2372   :  { %2431 = vmatpush3.msra.mxu1 %v2989_v53 }
0x2373   :  { %2432 = vmatprep.subr.mxu1 %v2723_v0 }
0x2374   :  { %2433 = vmatpush3.msra.mxu1 %v3000_v55  ;;  %v1750_v55 = vrot.slane %v1656_v43, 6 }
0x242d   :  { %v1734_v49 = vpop.f32.mrf.mxu1 }
0x242e   :  { %v1739_v50 = vrot.slane %v1734_v49, 6 }
0x242f   :  { %v2414_v52 = vpop.f32.mrf.mxu1 }
0x2430   :  { %v1741_v51 = vadd.f32 %v1739_v50, %v3029_v61 }
0x2432   :  { %2564 = vtanh.f32 %v1741_v51  ;;  %v2144_v2 = vmul.f32 -1.442695, %v1741_v51 }
0x2434   :  { %2566 = vpow2.f32 %v2144_v2  ;;  %v2149_v2 = vld [vmem:[#allocation10] ss:$0 sm:$0xff] }
0x243f   :  { %v2565_v54 = vpop.eup %2564 }
0x2440   :  { %1754 = vrot.lane.b32.xlu1 %v2565_v54, %s2725_s2 }
0x2441   :  { %v2567_v33 = vpop.eup %2566 }
0x2442   :  { %v1745_v56 = vadd.f32 1.0, %v2567_v33 }
0x2444   :  { %2568 = vrcp.f32 %v1745_v56 }
0x2451   :  { %v2569_v5 = vpop.eup %2568 }
0x2452   :  { %v1752_v58 = vmul.f32 %v2569_v5, %v1750_v55 }
0x24b2   :  { %v1755_v53 = vpop.permute.xlu1 %1754 }
0x24b3   :  { %v1757_v57 = vmul.f32 %v2569_v5, %v1755_v53 }
0x24b5   :  { %1759 = vrot.lane.b32.xlu0 %v1757_v57, %s2726_s24 }
0x2527   :  { %v1760_v6 = vpop.permute.xlu0 %1759 }
0x2528   :  { %v1762_v59 = vadd.f32 %v1760_v6, %v1752_v58 }
0x252a   :  { %2570 = vtanh.f32 %v1762_v59  ;;  %v1857_v22 = vrot.slane %v1762_v59, 6 }
0x2537   :  { %v2571_v60 = vpop.eup %2570 }
0x2538   :  { %1765 = vrot.lane.b32.xlu1 %v2571_v60, %s2725_s2 }
0x25aa   :  { %v1766_v7 = vpop.permute.xlu1 %1765 }
0x25ab   :  { %v1768_v62 = vmul.f32 %v2569_v5, %v1766_v7 }
0x25ad   :  { %v1770_v1 = vrot.slane %v1768_v62, 2  ;;  %v1992_v3 = vrot.slane %v1768_v62, 6 }
0x25af   :  { %1771 = vrot.lane.b32.xlu0 %v1770_v1, %s2726_s24  ;;  %v2003_v4 = vsel %vm2002_vm8, %v2001_v47, %v1992_v3  ;;  %v2008_v47 = vld [vmem:[%s3160_s7 + $0x8] sm:$0xff] }
0x2621   :  { %v1772_v8 = vpop.permute.xlu0 %1771 }
0x2622   :  { %2424 = vmatmul.mubr.msk.f32.vlgmr.msra.gmra.mxu0 %vm193_vm3, %v1772_v8 }
0x2623   :  { %2445 = vmatprep.mubr.msk.f32.mxu0 %vm2724_vm0, %v2723_v0 }
0x26e2   :  { %v1841_v9 = vpop.f32.mrf.mxu0 }
0x26e3   :  { %v1846_v11 = vrot.slane %v1841_v9, 4 }
0x26e4   :  { %v2425_v13 = vpop.f32.mrf.mxu0 }
0x26e5   :  { %v1848_v14 = vadd.f32 %v1846_v11, %v3029_v61 }
0x26e7   :  { %2572 = vtanh.f32 %v1848_v14  ;;  %v2146_v16 = vmul.f32 -1.442695, %v1848_v14 }
0x26e9   :  { %2574 = vpow2.f32 %v2146_v16 }
0x26f4   :  { %v2573_v15 = vpop.eup %2572 }
0x26f5   :  { %1861 = vrot.lane.b32.xlu1 %v2573_v15, %s2725_s2 }
0x26f6   :  { %v2575_v17 = vpop.eup %2574 }
0x26f7   :  { %v1852_v18 = vadd.f32 1.0, %v2575_v17 }
0x26f9   :  { %2576 = vrcp.f32 %v1852_v18 }
0x2706   :  { %v2577_v19 = vpop.eup %2576 }
0x2707   :  { %v1859_v23 = vmul.f32 %v2577_v19, %v1857_v22 }
0x2767   :  { %v1862_v20 = vpop.permute.xlu1 %1861 }
0x2768   :  { %v1864_v21 = vmul.f32 %v2577_v19, %v1862_v20 }
0x276a   :  { %1866 = vrot.lane.b32.xlu0 %v1864_v21, %s2726_s24 }
0x27dc   :  { %v1867_v63 = vpop.permute.xlu0 %1866 }
0x27dd   :  { %v1869_v24 = vadd.f32 %v1867_v63, %v1859_v23 }
0x27df   :  { %2578 = vtanh.f32 %v1869_v24  ;;  %v1964_v43 = vrot.slane %v1869_v24, 6 }
0x27ec   :  { %v2579_v25 = vpop.eup %2578 }
0x27ed   :  { %1872 = vrot.lane.b32.xlu1 %v2579_v25, %s2725_s2 }
0x285f   :  { %v1873_v26 = vpop.permute.xlu1 %1872 }
0x2860   :  { %v1875_v27 = vmul.f32 %v2577_v19, %v1873_v26 }
0x2862   :  { %v1877_v28 = vrot.slane %v1875_v27, 4  ;;  %v1994_v29 = vrot.slane %v1875_v27, 7 }
0x2864   :  { %1878 = vrot.lane.b32.xlu0 %v1877_v28, %s2726_s24  ;;  %v2004_v12 = vsel %vm1039_vm5, %v2003_v4, %v1994_v29 }
0x28d6   :  { %v1879_v30 = vpop.permute.xlu0 %1878 }
0x28d7   :  { %2435 = vmatmul.mubr.msk.f32.vlgmr.msra.gmra.mxu1 %vm193_vm3, %v1879_v30 }
0x2997   :  { %v1948_v31 = vpop.f32.mrf.mxu1 }
0x2998   :  { %v1953_v32 = vrot.slane %v1948_v31, 2 }
0x2999   :  { %v2436_v34 = vpop.f32.mrf.mxu1 }
0x299a   :  { %v1955_v35 = vadd.f32 %v1953_v32, %v3029_v61  ;;  %v2010_v61 = vld [vmem:[%s3160_s7 + $0x18] sm:$0xff]  ;;  %s2688_s7 = scalar_lea.vmem %s2102_s8, 128 }
0x299b   :  { %2438 = vmatpush3.msra.mxu0 %v2010_v61  ;;  %p2689_p11 = scmp.ne.s32.totalorder %s2102_s8, %s2688_s7  ;;  %p2694_p13 = scmp.lt.s32.totalorder %s2688_s7, %s2688_s7 }
0x299c   :  { %2580 = vtanh.f32 %v1955_v35  ;;  %v2148_v37 = vmul.f32 -1.442695, %v1955_v35  ;;  %2439 = vmatprep.subr.mxu0 %v2723_v0 }
0x299d   :  { %2440 = vmatpush3.msra.mxu0 %v2009_v10  ;;  %p2695_p0 = por %p2694_p13, %p2693_p12 }
0x299e   :  { %2582 = vpow2.f32 %v2148_v37  ;;  %2441 = vmatprep.subr.mxu0 %v2723_v0 }
0x299f   :  { %2442 = vmatpush3.msra.mxu0 %v2008_v47  ;;  %p2696_p1 = pnand %p2695_p0, %p2689_p11 }
0x29a0   :  { %2443 = vmatprep.subr.mxu0 %v2723_v0 }
0x29a1   :  { %2444 = vmatpush3.msra.mxu0 %v2007_v48 }
0x29a9   :  { %v2581_v36 = vpop.eup %2580 }
0x29aa   :  { %1968 = vrot.lane.b32.xlu1 %v2581_v36, %s2725_s2 }
0x29ab   :  { %v2583_v38 = vpop.eup %2582 }
0x29ac   :  { %v1959_v39 = vadd.f32 1.0, %v2583_v38 }
0x29ae   :  { %2584 = vrcp.f32 %v1959_v39 }
0x29bb   :  { %v2585_v40 = vpop.eup %2584 }
0x29bc   :  { %v1966_v44 = vmul.f32 %v2585_v40, %v1964_v43 }
0x2a1c   :  { %v1969_v41 = vpop.permute.xlu1 %1968 }
0x2a1d   :  { %v1971_v42 = vmul.f32 %v2585_v40, %v1969_v41 }
0x2a1f   :  { %1973 = vrot.lane.b32.xlu0 %v1971_v42, %s2726_s24 }
0x2a91   :  { %v1974_v45 = vpop.permute.xlu0 %1973 }
0x2a92   :  { %v1976_v46 = vadd.f32 %v1974_v45, %v1966_v44 }
0x2a94   :  { %2586 = vtanh.f32 %v1976_v46 }
0x2aa1   :  { %v2587_v49 = vpop.eup %2586 }
0x2aa2   :  { %1979 = vrot.lane.b32.xlu1 %v2587_v49, %s2725_s2 }
0x2b14   :  { %v1980_v50 = vpop.permute.xlu1 %1979 }
0x2b15   :  { %v1982_v52 = vmul.f32 %v2585_v40, %v1980_v50 }
0x2b17   :  { %v2006_v51 = vsel %vm2005_vm9, %v2004_v12, %v1982_v52 }
0x2b18   :  { %2019 = vrot.lane.b32.xlu0 %v2006_v51, %s2726_s24 }
0x2b8a   :  { %v2020_v54 = vpop.permute.xlu0 %2019 }
0x2b8b   :  { %2446 = vmatmul.mubr.msk.f32.vlgmr.msra.gmra.mxu0 %vm193_vm3, %v2020_v54 }
0x2c4b   :  { %v2089_v33 = vpop.f32.mrf.mxu0 }
0x2c4c   :  { %v2090_v56 = vadd.f32 %v2149_v2, %v2089_v33 }
0x2c4d   :  { %v2447_v0 = vpop.f32.mrf.mxu0 }
0x2c4e   :  { %2094 = vst.msk [vmem:[#allocation11] sm:$0xff] %vm2093_vm10, %v2090_v56 }
0x2c4f   :  { %2699 = shalt.err (!%p2696_p1)
}
0x2c50   :  { %2104 = dma.vmem_to_hbm [thread:$0]  %s2102_s8, 128, %s3162_s9, [#allocation4]  }
0x2c51   :  { %2714 = dma.done.wait [#allocation4], 128  }
0x2c52   :  { %2715 = vsyncadd [#allocation4], 4294967168 }
0x2c53   :  { %2108 = vsyncpa [#allocation3], 1 }
0x2c54   :  { %2109 = vsyncpa [#allocation6], 1 }
0x2c55   :  { %2110 = vsyncpa [#allocation9], 1 }
0x2c56   :  { %2111 = vsyncpa [#allocation4], 1 }

</bundles_post_ra>
